<compile_context>
chip_gen: v5e
topology: v5e:2x2
jax: 0.10.0
libtpu: 0.0.40
codegen_flags: <defaults>
</compile_context>

<pallas_src>
import math

import numpy as np
import jax
import jax.numpy as jnp
from jax import lax
from jax.experimental import pallas as pl
from jax.experimental.pallas import tpu as pltpu


def _round_up(v, m):
    return ((v + m - 1) // m) * m


def make_garch_dcc_kernel(*, N, TILE, HX, HD, MG, MD, buffer, D_g, D_d,
                          nsg, nsd, dpows, dcorr, C1, C2, n_ahead):
    """Fused GARCH + DCC kernel for one time tile (all args are host statics)."""
    N2 = N * N
    WX = TILE + HX          # x^2 window width (GARCH scan)
    WSIG = TILE + HD        # sigma / z window width (DCC scan)
    BP = 6 + 2 * N          # column offset of beta^(2^j) in the param pack

    def kernel(xA_ref, xB_ref, p_ref, cov_ref, sg_ref, sd_ref):
        f32 = jnp.float32

        # --- tile-invariant parameters (host-transformed, one tiny block) ---
        p = p_ref[...]                                   # [N2, 6 + 2N + nsg]
        corbar = p[:, 0:1]                               # [N2, 1]
        gp = p[0:N, :]                                   # [N, :]
        alpha, wg, gcorr = gp[:, 1:2], gp[:, 2:3], gp[:, 3:4]
        mi = [p[:, 6 + a:7 + a] > 0.5 for a in range(N)]          # k // N == a
        mj = [p[:, 6 + N + a:7 + N + a] > 0.5 for a in range(N)]  # k %  N == a

        def pair_expand(v, W):
            # v: [N, W] -> (A, B) with A[k] = v[k // N], B[k] = v[k % N].
            A = jnp.zeros((N2, W), f32)
            B = jnp.zeros((N2, W), f32)
            for a in range(N):
                ra = v[a:a + 1, :]
                A = jnp.where(mi[a], ra, A)
                B = jnp.where(mj[a], ra, B)
            return A, B

        xh = xA_ref[:, TILE - HX:]                       # [N, HX]   lag halo
        xc = xB_ref[...]                                 # [N, TILE] current tile

        # ---- GARCH: log-step decayed prefix scan of x^2 along lanes --------
        sg_ref[:, :MG] = jnp.zeros((N, MG), f32)         # zero left margin
        sg_ref[:, MG:MG + HX] = xh * xh
        sg_ref[:, MG + HX:] = xc * xc
        for j in range(nsg):                             # ~log2(WX) steps
            k = 1 << j
            bk = gp[:, BP + j:BP + j + 1]                # beta^(2^j)  [N, 1]
            sg_ref[:, MG:] = sg_ref[:, MG:] + bk * sg_ref[:, MG - k:MG - k + WX]
        # Exact truncation at lag D_g (matches torch's truncated EWMA):
        #   acc[t] = S[t - buffer] - beta^(D_g+1-buffer) * S[t - D_g - 1]
        o1 = MG + HX - HD - buffer
        o2 = MG + HX - HD - D_g - 1
        acc = sg_ref[:, o1:o1 + WSIG] - gcorr * sg_ref[:, o2:o2 + WSIG]
        var = wg + alpha * acc                           # [N, WSIG]
        if n_ahead > 1:
            var = gp[:, 4:5] + gp[:, 5:6] * var          # co1*omega^2 + co2*var
        inv_sig = lax.rsqrt(var)                         # EUP
        xs = jnp.concatenate([xh[:, HX - HD:], xc], axis=1)   # [N, WSIG] aligned
        z = xs * inv_sig                                 # standardized residuals
        sigma = var[:, HD:] * inv_sig[:, HD:]            # = sqrt(var), out cols

        # ---- DCC: flat outer products + log-step scan (scalar decay b) -----
        zi, zj = pair_expand(z, WSIG)
        sd_ref[:, :MD] = jnp.zeros((N2, MD), f32)        # zero left margin
        sd_ref[:, MD:] = zi * zj
        for j in range(nsd):
            k = 1 << j
            sd_ref[:, MD:] = (sd_ref[:, MD:]
                              + dpows[j] * sd_ref[:, MD - k:MD - k + WSIG])
        oA = MD + HD - buffer
        oB = MD + HD - D_d - 1
        zz_ma = sd_ref[:, oA:oA + TILE] - dcorr * sd_ref[:, oB:oB + TILE]
        cor = C1 * corbar + C2 * zz_ma                   # [N2, TILE]

        # ---- cov2cor fused with cor2cov:  cov = cor * r_i * r_j,
        #      r_a = sigma_a / sqrt(cor_diag_a)  -----------------------------
        row = lax.broadcasted_iota(jnp.int32, (N, 1), 0)
        diag = jnp.zeros((N, TILE), f32)
        for a in range(N):
            diag = jnp.where(row == a, cor[a * (N + 1):a * (N + 1) + 1, :], diag)
        # NOTE: 1e-30 guard is an intentional (harmless) deviation: diag > 0.
        r = sigma * lax.rsqrt(jnp.maximum(diag, 1e-30))  # [N, TILE]
        ri, rj = pair_expand(r, TILE)
        cov_ref[...] = (cor * ri * rj).astype(cov_ref.dtype)   # lane-dense store

    return kernel


def garch_dcc_forward(x, params, *, buffer=1, n_ahead=1, tile_t=1024):
    """GarchDCCNet.forward(x) -> cov_mat of shape [T, N, N]."""
    x = jnp.asarray(x, jnp.float32)
    T, N = x.shape
    N2 = N * N
    f64 = np.float64

    # Host-side scalar logic (mirrors torch's no_grad `.item()` computations).
    def sig(v):
        return 1.0 / (1.0 + np.exp(-np.asarray(v, f64)))

    alpha = sig(params["alpha"]).reshape(N)
    beta = (sig(params["beta"]) * 0.9999).reshape(N)
    omega = sig(params["omega"]).reshape(N)
    omega2 = omega * omega
    wg = omega2 / (1.0 - beta)

    beta_max = float(beta.max())
    nw_g = min(math.ceil(math.log(0.01, beta_max)) + 1, 100)
    D_g = max(buffer, min(T - 1, nw_g + buffer - 1))     # max useful GARCH lag

    a_dcc = float(sig(params["a"]).reshape(-1)[0])
    b_dcc = float(sig(params["b"]).reshape(-1)[0]) * 0.99
    a_b = a_dcc + b_dcc
    w_dcc = 0.01 if a_b > 1.0 else (1.0 - a_b) / (1.0 - b_dcc)
    nw_d = min(math.ceil(math.log(0.01, b_dcc)) + 1, 100)
    D_d = max(buffer, min(T - 1, nw_d + buffer - 1))     # max useful DCC lag

    if n_ahead > 1:
        abg = np.clip(alpha + beta, 0.0, 0.99)
        co2g = (1.0 / n_ahead) * (1.0 - abg ** n_ahead) / (1.0 - abg)
        co1g = (1.0 - co2g) / (1.0 - abg)
        vadd, vmul = co1g * omega2, co2g
        abc = min(max(a_b, 0.0), 0.99)
        co2d = (1.0 / n_ahead) * (1.0 - abc ** n_ahead) / (1.0 - abc)
        co1d = 1.0 - co2d
        C1, C2 = co1d + co2d * w_dcc, co2d * a_dcc
    else:
        vadd, vmul = np.zeros(N, f64), np.ones(N, f64)
        C1, C2 = w_dcc, a_dcc

    # Tile / halo sizes (all multiples of 128 -> lane-aligned slices & stores).
    HD = _round_up(D_d + 1, 128)                 # z halo needed by the DCC EWMA
    HX = _round_up(HD + D_g + 1, 128)            # x halo needed by the GARCH EWMA
    TILE = max(128, min(_round_up(max(tile_t, 1), 128),
                        _round_up(-(-T // 2), 128)))     # >=2 tiles when T allows
    TILE = max(TILE, HX)                         # halo must fit in one prev block
    assert TILE % 128 == 0 and HX <= TILE
    num_tiles = -(-T // TILE)
    WX, WSIG = TILE + HX, TILE + HD
    nsg = max(1, math.ceil(math.log2(WX)))       # GARCH scan steps
    nsd = max(1, math.ceil(math.log2(WSIG)))     # DCC scan steps
    MG = _round_up(1 << (nsg - 1), 128)          # zero left margin (max shift)
    MD = _round_up(1 << (nsd - 1), 128)

    # Host-precomputed, tile-invariant constants.
    dpows = tuple(float(b_dcc ** (1 << j)) for j in range(nsd))
    dcorr = float(b_dcc ** (D_d + 1 - buffer))
    gcorr = beta ** (D_g + 1 - buffer)
    bpows = [beta ** (1 << j) for j in range(nsg)]
    corbar = np.asarray(params["cor_mat_bar"], f64).reshape(N2)

    PW = 6 + 2 * N + nsg
    pvec = np.zeros((N2, PW), np.float32)
    pvec[:, 0] = corbar
    pvec[:N, 1], pvec[:N, 2], pvec[:N, 3] = alpha, wg, gcorr
    pvec[:N, 4], pvec[:N, 5] = vadd, vmul
    kk = np.arange(N2)
    for a in range(N):
        pvec[kk // N == a, 6 + a] = 1.0          # pair-index masks (select)
        pvec[kk % N == a, 6 + N + a] = 1.0
    for j in range(nsg):
        pvec[:N, 6 + 2 * N + j] = bpows[j]       # beta^(2^j), per asset

    # x, time-on-lanes, with one TILE of leading zeros (halo for tile 0; also
    # matches the conv1d zero padding) and trailing zeros to a full grid.
    tot = (num_tiles + 1) * TILE
    xT = jnp.transpose(x)                                       # [N, T]
    xT_pad = jnp.pad(xT, ((0, 0), (TILE, tot - TILE - T)))

    kernel = make_garch_dcc_kernel(
        N=N, TILE=TILE, HX=HX, HD=HD, MG=MG, MD=MD, buffer=buffer,
        D_g=D_g, D_d=D_d, nsg=nsg, nsd=nsd, dpows=dpows, dcorr=dcorr,
        C1=float(C1), C2=float(C2), n_ahead=n_ahead)

    cov_t = pl.pallas_call(
        kernel,
        out_shape=jax.ShapeDtypeStruct((N2, num_tiles * TILE), jnp.float32),
        grid=(num_tiles,),
        in_specs=[
            pl.BlockSpec((N, TILE), lambda i: (0, i)),        # x halo block
            pl.BlockSpec((N, TILE), lambda i: (0, i + 1)),    # x current block
            pl.BlockSpec((N2, PW), lambda i: (0, 0)),         # packed params
        ],
        out_specs=pl.BlockSpec((N2, TILE), lambda i: (0, i)),
        scratch_shapes=[
            pltpu.VMEM((N, MG + WX), jnp.float32),            # GARCH scan buffer
            pltpu.VMEM((N2, MD + WSIG), jnp.float32),         # DCC scan buffer
        ],
        compiler_params=pltpu.CompilerParams(
            dimension_semantics=("parallel",),
            vmem_limit_bytes=32 * 1024 * 1024),
    )(xT_pad, xT_pad, jnp.asarray(pvec))

    return jnp.transpose(cov_t)[:T].reshape(T, N, N)


def garch_dcc_reference(x, params, *, buffer=1, n_ahead=1):
    """Pure-numpy (float64) reference of GarchDCCNet.forward for validation."""
    x = np.asarray(x, np.float64)
    T, N = x.shape

    def sig(v):
        return 1.0 / (1.0 + np.exp(-np.asarray(v, np.float64)))

    alpha = sig(params["alpha"]).reshape(1, N)
    beta = sig(params["beta"]).reshape(1, N) * 0.9999
    omega = sig(params["omega"]).reshape(1, N)
    omega2 = omega ** 2
    w = omega2 / (1.0 - beta)
    nw = min(math.ceil(math.log(0.01, float(beta.max()))) + 1, 100)
    x2 = x ** 2
    acc = np.zeros((T, N))
    for d in range(buffer, nw + buffer):
        if d < T:
            acc[d:] += (beta ** (d - buffer)) * x2[:T - d]
    var = w + alpha * acc
    if n_ahead > 1:
        a_b = np.clip(alpha + beta, 0.0, 0.99)
        co2 = (1.0 / n_ahead) * (1.0 - a_b ** n_ahead) / (1.0 - a_b)
        co1 = (1.0 - co2) / (1.0 - a_b)
        var = co1 * omega2 + co2 * var
    sigma = np.sqrt(var)

    a = float(sig(params["a"]).reshape(-1)[0])
    b = float(sig(params["b"]).reshape(-1)[0]) * 0.99
    zt = x / sigma
    zz = np.einsum("ti,tj->tij", zt, zt).reshape(T, N * N)
    a_b = a + b
    w_d = 0.01 if a_b > 1.0 else (1.0 - a_b) / (1.0 - b)
    nw_d = min(math.ceil(math.log(0.01, b)) + 1, 100)
    zz_ma = np.zeros_like(zz)
    for d in range(buffer, nw_d + buffer):
        if d < T:
            zz_ma[d:] += (b ** (d - buffer)) * zz[:T - d]
    corbar = np.asarray(params["cor_mat_bar"], np.float64).reshape(1, N * N)
    cor = w_d * corbar + a * zz_ma
    if n_ahead > 1:
        a_b_c = min(max(a_b, 0.0), 0.99)
        co2 = (1.0 / n_ahead) * (1.0 - a_b_c ** n_ahead) / (1.0 - a_b_c)
        cor = (1.0 - co2) * corbar + co2 * cor
    cor = cor.reshape(T, N, N)
    diag = cor[:, np.arange(N), np.arange(N)]
    inv = 1.0 / np.sqrt(diag)
    cor = cor * inv[:, :, None] * inv[:, None, :]
    return cor * sigma[:, :, None] * sigma[:, None, :]


def init_params(x, key):
    """Deterministic synthetic init matching GarchDCCNet.__init__ shapes."""
    T, N = x.shape
    ks = jax.random.split(key, 5)

    def uni(k, shape, lo, hi):
        return jax.random.uniform(k, shape, jnp.float32, lo, hi)

    alpha = uni(ks[0], (1, N), -4.0, -2.0)      # alpha_order = 1
    beta = uni(ks[1], (1, N), 1.0, 3.0)         # beta_order = 1
    omega = uni(ks[2], (N,), -3.0, -1.0)
    a = uni(ks[3], (1,), -4.0, -2.0)
    b = uni(ks[4], (1,), 2.0, 4.0)

    # __init__-time buffer: cor_mat_bar = torch_cor(x, center=True) (plain JAX glue)
    cov = x.T @ x / T
    mu = jnp.mean(x, axis=0, keepdims=True)
    cov = cov - mu.T @ mu
    d = jnp.diagonal(cov)
    inv = 1.0 / jnp.sqrt(d)
    corbar = cov * inv[:, None] * inv[None, :]

    return dict(alpha=alpha, beta=beta, omega=omega, a=a, b=b,
                cor_mat_bar=corbar.astype(jnp.float32))


if __name__ == "__main__":
    key = jax.random.PRNGKey(0)
    k1x, k1p, k2x, k2p = jax.random.split(key, 4)

    # Case 1: small shapes (seq=8 observations, 4 assets) -- single time tile.
    T1, N1 = 8, 4
    x1 = 0.1 * jax.random.normal(k1x, (T1, N1), jnp.float32)
    p1 = init_params(x1, k1p)
    cov1 = jax.block_until_ready(garch_dcc_forward(x1, p1, buffer=1, n_ahead=1))
    assert cov1.shape == (T1, N1, N1)
    assert bool(jnp.all(jnp.isfinite(cov1)))
    ref1 = garch_dcc_reference(np.asarray(x1), p1, buffer=1, n_ahead=1)
    assert np.allclose(np.asarray(cov1), ref1, rtol=2e-3, atol=1e-5), "case 1 mismatch"

    # Case 2: multi-tile path (3 tiles of 256 time steps) -- checks halo logic.
    T2, Na = 520, 4
    x2 = 0.1 * jax.random.normal(k2x, (T2, Na), jnp.float32)
    p2 = init_params(x2, k2p)
    cov2 = jax.block_until_ready(
        garch_dcc_forward(x2, p2, buffer=1, n_ahead=1, tile_t=256))
    assert cov2.shape == (T2, Na, Na)
    assert bool(jnp.all(jnp.isfinite(cov2)))
    ref2 = garch_dcc_reference(np.asarray(x2), p2, buffer=1, n_ahead=1)
    assert np.allclose(np.asarray(cov2), ref2, rtol=2e-3, atol=1e-5), "case 2 mismatch"

    print("KERNEL_OK")
</pallas_src>

<mosaic_0001>
module attributes {stable_mosaic.version = 11 : i64} {
  func.func @kernel(%arg0: i32, %arg1: memref<4x256xf32, #tpu.memory_space<vmem>>, %arg2: memref<4x256xf32, #tpu.memory_space<vmem>>, %arg3: memref<16x23xf32, #tpu.memory_space<vmem>>, %arg4: memref<16x256xf32, #tpu.memory_space<vmem>>, %arg5: memref<4x768xf32, #tpu.memory_space<vmem>>, %arg6: memref<16x640xf32, #tpu.memory_space<vmem>>) attributes {dimension_semantics = [#tpu.dimension_semantics<parallel>], iteration_bounds = array<i64: 1>, scalar_prefetch = 0 : i64, scratch_operands = 2 : i64, tpu.core_type = #tpu.core_type<tc>, window_params = [{transform_indices = @transform_0, window_bounds = array<i64: 4, 256>}, {transform_indices = @transform_1, window_bounds = array<i64: 4, 256>}, {pipeline_mode = #tpu.pipeline_mode<synchronous>, transform_indices = @transform_2, window_bounds = array<i64: 16, 23>}, {transform_indices = @transform_3, window_bounds = array<i64: 16, 256>}]} {
    %c0 = arith.constant 0 : index
    %c0_0 = arith.constant 0 : index
    %0 = vector.load %arg3[%c0, %c0_0] : memref<16x23xf32, #tpu.memory_space<vmem>>, vector<16x23xf32>
    %1 = vector.extract_strided_slice %0 {offsets = [0, 0], sizes = [16, 1], strides = [1, 1]} : vector<16x23xf32> to vector<16x1xf32>
    %2 = vector.extract_strided_slice %0 {offsets = [0, 0], sizes = [4, 23], strides = [1, 1]} : vector<16x23xf32> to vector<4x23xf32>
    %3 = vector.extract_strided_slice %2 {offsets = [0, 1], sizes = [4, 1], strides = [1, 1]} : vector<4x23xf32> to vector<4x1xf32>
    %4 = vector.extract_strided_slice %2 {offsets = [0, 2], sizes = [4, 1], strides = [1, 1]} : vector<4x23xf32> to vector<4x1xf32>
    %5 = vector.extract_strided_slice %2 {offsets = [0, 3], sizes = [4, 1], strides = [1, 1]} : vector<4x23xf32> to vector<4x1xf32>
    %6 = vector.extract_strided_slice %0 {offsets = [0, 6], sizes = [16, 1], strides = [1, 1]} : vector<16x23xf32> to vector<16x1xf32>
    %cst = arith.constant 5.000000e-01 : f32
    %7 = vector.broadcast %cst : f32 to vector<16x1xf32>
    %8 = arith.cmpf ogt, %6, %7 : vector<16x1xf32>
    %9 = vector.extract_strided_slice %0 {offsets = [0, 7], sizes = [16, 1], strides = [1, 1]} : vector<16x23xf32> to vector<16x1xf32>
    %cst_1 = arith.constant 5.000000e-01 : f32
    %10 = vector.broadcast %cst_1 : f32 to vector<16x1xf32>
    %11 = arith.cmpf ogt, %9, %10 : vector<16x1xf32>
    %12 = vector.extract_strided_slice %0 {offsets = [0, 8], sizes = [16, 1], strides = [1, 1]} : vector<16x23xf32> to vector<16x1xf32>
    %cst_2 = arith.constant 5.000000e-01 : f32
    %13 = vector.broadcast %cst_2 : f32 to vector<16x1xf32>
    %14 = arith.cmpf ogt, %12, %13 : vector<16x1xf32>
    %15 = vector.extract_strided_slice %0 {offsets = [0, 9], sizes = [16, 1], strides = [1, 1]} : vector<16x23xf32> to vector<16x1xf32>
    %cst_3 = arith.constant 5.000000e-01 : f32
    %16 = vector.broadcast %cst_3 : f32 to vector<16x1xf32>
    %17 = arith.cmpf ogt, %15, %16 : vector<16x1xf32>
    %18 = vector.extract_strided_slice %0 {offsets = [0, 10], sizes = [16, 1], strides = [1, 1]} : vector<16x23xf32> to vector<16x1xf32>
    %cst_4 = arith.constant 5.000000e-01 : f32
    %19 = vector.broadcast %cst_4 : f32 to vector<16x1xf32>
    %20 = arith.cmpf ogt, %18, %19 : vector<16x1xf32>
    %21 = vector.extract_strided_slice %0 {offsets = [0, 11], sizes = [16, 1], strides = [1, 1]} : vector<16x23xf32> to vector<16x1xf32>
    %cst_5 = arith.constant 5.000000e-01 : f32
    %22 = vector.broadcast %cst_5 : f32 to vector<16x1xf32>
    %23 = arith.cmpf ogt, %21, %22 : vector<16x1xf32>
    %24 = vector.extract_strided_slice %0 {offsets = [0, 12], sizes = [16, 1], strides = [1, 1]} : vector<16x23xf32> to vector<16x1xf32>
    %cst_6 = arith.constant 5.000000e-01 : f32
    %25 = vector.broadcast %cst_6 : f32 to vector<16x1xf32>
    %26 = arith.cmpf ogt, %24, %25 : vector<16x1xf32>
    %27 = vector.extract_strided_slice %0 {offsets = [0, 13], sizes = [16, 1], strides = [1, 1]} : vector<16x23xf32> to vector<16x1xf32>
    %cst_7 = arith.constant 5.000000e-01 : f32
    %28 = vector.broadcast %cst_7 : f32 to vector<16x1xf32>
    %29 = arith.cmpf ogt, %27, %28 : vector<16x1xf32>
    %c0_8 = arith.constant 0 : index
    %c0_9 = arith.constant 0 : index
    %30 = vector.load %arg1[%c0_8, %c0_9] : memref<4x256xf32, #tpu.memory_space<vmem>>, vector<4x256xf32>
    %c0_10 = arith.constant 0 : index
    %c0_11 = arith.constant 0 : index
    %31 = vector.load %arg2[%c0_10, %c0_11] : memref<4x256xf32, #tpu.memory_space<vmem>>, vector<4x256xf32>
    %cst_12 = arith.constant 0.000000e+00 : f32
    %32 = vector.broadcast %cst_12 : f32 to vector<4x256xf32>
    %c0_13 = arith.constant 0 : index
    %c0_14 = arith.constant 0 : index
    %33 = vector.load %arg5[%c0_13, %c0_14] : memref<4x768xf32, #tpu.memory_space<vmem>>, vector<4x256xf32>
    tpu.vector_store %arg5[%c0_13, %c0_14], %32 {strides = array<i32>} : memref<4x768xf32, #tpu.memory_space<vmem>>, vector<4x256xf32>,
    %34 = arith.mulf %30, %30 : vector<4x256xf32>
    %c0_15 = arith.constant 0 : index
    %c256 = arith.constant 256 : index
    %35 = vector.load %arg5[%c0_15, %c256] : memref<4x768xf32, #tpu.memory_space<vmem>>, vector<4x256xf32>
    tpu.vector_store %arg5[%c0_15, %c256], %34 {strides = array<i32>} : memref<4x768xf32, #tpu.memory_space<vmem>>, vector<4x256xf32>,
    %36 = arith.mulf %31, %31 : vector<4x256xf32>
    %c0_16 = arith.constant 0 : index
    %c512 = arith.constant 512 : index
    %37 = vector.load %arg5[%c0_16, %c512] : memref<4x768xf32, #tpu.memory_space<vmem>>, vector<4x256xf32>
    tpu.vector_store %arg5[%c0_16, %c512], %36 {strides = array<i32>} : memref<4x768xf32, #tpu.memory_space<vmem>>, vector<4x256xf32>,
    %38 = vector.extract_strided_slice %2 {offsets = [0, 14], sizes = [4, 1], strides = [1, 1]} : vector<4x23xf32> to vector<4x1xf32>
    %c0_17 = arith.constant 0 : index
    %c256_18 = arith.constant 256 : index
    %39 = vector.load %arg5[%c0_17, %c256_18] : memref<4x768xf32, #tpu.memory_space<vmem>>, vector<4x512xf32>
    %c0_19 = arith.constant 0 : index
    %c255 = arith.constant 255 : index
    %40 = vector.load %arg5[%c0_19, %c255] : memref<4x768xf32, #tpu.memory_space<vmem>>, vector<4x512xf32>
    %41 = vector.broadcast %38 : vector<4x1xf32> to vector<4x512xf32>
    %42 = arith.mulf %41, %40 : vector<4x512xf32>
    %43 = arith.addf %39, %42 : vector<4x512xf32>
    %c0_20 = arith.constant 0 : index
    %c256_21 = arith.constant 256 : index
    %44 = vector.load %arg5[%c0_20, %c256_21] : memref<4x768xf32, #tpu.memory_space<vmem>>, vector<4x512xf32>
    tpu.vector_store %arg5[%c0_20, %c256_21], %43 {strides = array<i32>} : memref<4x768xf32, #tpu.memory_space<vmem>>, vector<4x512xf32>,
    %45 = vector.extract_strided_slice %2 {offsets = [0, 15], sizes = [4, 1], strides = [1, 1]} : vector<4x23xf32> to vector<4x1xf32>
    %c0_22 = arith.constant 0 : index
    %c256_23 = arith.constant 256 : index
    %46 = vector.load %arg5[%c0_22, %c256_23] : memref<4x768xf32, #tpu.memory_space<vmem>>, vector<4x512xf32>
    %c0_24 = arith.constant 0 : index
    %c254 = arith.constant 254 : index
    %47 = vector.load %arg5[%c0_24, %c254] : memref<4x768xf32, #tpu.memory_space<vmem>>, vector<4x512xf32>
    %48 = vector.broadcast %45 : vector<4x1xf32> to vector<4x512xf32>
    %49 = arith.mulf %48, %47 : vector<4x512xf32>
    %50 = arith.addf %46, %49 : vector<4x512xf32>
    %c0_25 = arith.constant 0 : index
    %c256_26 = arith.constant 256 : index
    %51 = vector.load %arg5[%c0_25, %c256_26] : memref<4x768xf32, #tpu.memory_space<vmem>>, vector<4x512xf32>
    tpu.vector_store %arg5[%c0_25, %c256_26], %50 {strides = array<i32>} : memref<4x768xf32, #tpu.memory_space<vmem>>, vector<4x512xf32>,
    %52 = vector.extract_strided_slice %2 {offsets = [0, 16], sizes = [4, 1], strides = [1, 1]} : vector<4x23xf32> to vector<4x1xf32>
    %c0_27 = arith.constant 0 : index
    %c256_28 = arith.constant 256 : index
    %53 = vector.load %arg5[%c0_27, %c256_28] : memref<4x768xf32, #tpu.memory_space<vmem>>, vector<4x512xf32>
    %c0_29 = arith.constant 0 : index
    %c252 = arith.constant 252 : index
    %54 = vector.load %arg5[%c0_29, %c252] : memref<4x768xf32, #tpu.memory_space<vmem>>, vector<4x512xf32>
    %55 = vector.broadcast %52 : vector<4x1xf32> to vector<4x512xf32>
    %56 = arith.mulf %55, %54 : vector<4x512xf32>
    %57 = arith.addf %53, %56 : vector<4x512xf32>
    %c0_30 = arith.constant 0 : index
    %c256_31 = arith.constant 256 : index
    %58 = vector.load %arg5[%c0_30, %c256_31] : memref<4x768xf32, #tpu.memory_space<vmem>>, vector<4x512xf32>
    tpu.vector_store %arg5[%c0_30, %c256_31], %57 {strides = array<i32>} : memref<4x768xf32, #tpu.memory_space<vmem>>, vector<4x512xf32>,
    %59 = vector.extract_strided_slice %2 {offsets = [0, 17], sizes = [4, 1], strides = [1, 1]} : vector<4x23xf32> to vector<4x1xf32>
    %c0_32 = arith.constant 0 : index
    %c256_33 = arith.constant 256 : index
    %60 = vector.load %arg5[%c0_32, %c256_33] : memref<4x768xf32, #tpu.memory_space<vmem>>, vector<4x512xf32>
    %c0_34 = arith.constant 0 : index
    %c248 = arith.constant 248 : index
    %61 = vector.load %arg5[%c0_34, %c248] : memref<4x768xf32, #tpu.memory_space<vmem>>, vector<4x512xf32>
    %62 = vector.broadcast %59 : vector<4x1xf32> to vector<4x512xf32>
    %63 = arith.mulf %62, %61 : vector<4x512xf32>
    %64 = arith.addf %60, %63 : vector<4x512xf32>
    %c0_35 = arith.constant 0 : index
    %c256_36 = arith.constant 256 : index
    %65 = vector.load %arg5[%c0_35, %c256_36] : memref<4x768xf32, #tpu.memory_space<vmem>>, vector<4x512xf32>
    tpu.vector_store %arg5[%c0_35, %c256_36], %64 {strides = array<i32>} : memref<4x768xf32, #tpu.memory_space<vmem>>, vector<4x512xf32>,
    %66 = vector.extract_strided_slice %2 {offsets = [0, 18], sizes = [4, 1], strides = [1, 1]} : vector<4x23xf32> to vector<4x1xf32>
    %c0_37 = arith.constant 0 : index
    %c256_38 = arith.constant 256 : index
    %67 = vector.load %arg5[%c0_37, %c256_38] : memref<4x768xf32, #tpu.memory_space<vmem>>, vector<4x512xf32>
    %c0_39 = arith.constant 0 : index
    %c240 = arith.constant 240 : index
    %68 = vector.load %arg5[%c0_39, %c240] : memref<4x768xf32, #tpu.memory_space<vmem>>, vector<4x512xf32>
    %69 = vector.broadcast %66 : vector<4x1xf32> to vector<4x512xf32>
    %70 = arith.mulf %69, %68 : vector<4x512xf32>
    %71 = arith.addf %67, %70 : vector<4x512xf32>
    %c0_40 = arith.constant 0 : index
    %c256_41 = arith.constant 256 : index
    %72 = vector.load %arg5[%c0_40, %c256_41] : memref<4x768xf32, #tpu.memory_space<vmem>>, vector<4x512xf32>
    tpu.vector_store %arg5[%c0_40, %c256_41], %71 {strides = array<i32>} : memref<4x768xf32, #tpu.memory_space<vmem>>, vector<4x512xf32>,
    %73 = vector.extract_strided_slice %2 {offsets = [0, 19], sizes = [4, 1], strides = [1, 1]} : vector<4x23xf32> to vector<4x1xf32>
    %c0_42 = arith.constant 0 : index
    %c256_43 = arith.constant 256 : index
    %74 = vector.load %arg5[%c0_42, %c256_43] : memref<4x768xf32, #tpu.memory_space<vmem>>, vector<4x512xf32>
    %c0_44 = arith.constant 0 : index
    %c224 = arith.constant 224 : index
    %75 = vector.load %arg5[%c0_44, %c224] : memref<4x768xf32, #tpu.memory_space<vmem>>, vector<4x512xf32>
    %76 = vector.broadcast %73 : vector<4x1xf32> to vector<4x512xf32>
    %77 = arith.mulf %76, %75 : vector<4x512xf32>
    %78 = arith.addf %74, %77 : vector<4x512xf32>
    %c0_45 = arith.constant 0 : index
    %c256_46 = arith.constant 256 : index
    %79 = vector.load %arg5[%c0_45, %c256_46] : memref<4x768xf32, #tpu.memory_space<vmem>>, vector<4x512xf32>
    tpu.vector_store %arg5[%c0_45, %c256_46], %78 {strides = array<i32>} : memref<4x768xf32, #tpu.memory_space<vmem>>, vector<4x512xf32>,
    %80 = vector.extract_strided_slice %2 {offsets = [0, 20], sizes = [4, 1], strides = [1, 1]} : vector<4x23xf32> to vector<4x1xf32>
    %c0_47 = arith.constant 0 : index
    %c256_48 = arith.constant 256 : index
    %81 = vector.load %arg5[%c0_47, %c256_48] : memref<4x768xf32, #tpu.memory_space<vmem>>, vector<4x512xf32>
    %c0_49 = arith.constant 0 : index
    %c192 = arith.constant 192 : index
    %82 = vector.load %arg5[%c0_49, %c192] : memref<4x768xf32, #tpu.memory_space<vmem>>, vector<4x512xf32>
    %83 = vector.broadcast %80 : vector<4x1xf32> to vector<4x512xf32>
    %84 = arith.mulf %83, %82 : vector<4x512xf32>
    %85 = arith.addf %81, %84 : vector<4x512xf32>
    %c0_50 = arith.constant 0 : index
    %c256_51 = arith.constant 256 : index
    %86 = vector.load %arg5[%c0_50, %c256_51] : memref<4x768xf32, #tpu.memory_space<vmem>>, vector<4x512xf32>
    tpu.vector_store %arg5[%c0_50, %c256_51], %85 {strides = array<i32>} : memref<4x768xf32, #tpu.memory_space<vmem>>, vector<4x512xf32>,
    %87 = vector.extract_strided_slice %2 {offsets = [0, 21], sizes = [4, 1], strides = [1, 1]} : vector<4x23xf32> to vector<4x1xf32>
    %c0_52 = arith.constant 0 : index
    %c256_53 = arith.constant 256 : index
    %88 = vector.load %arg5[%c0_52, %c256_53] : memref<4x768xf32, #tpu.memory_space<vmem>>, vector<4x512xf32>
    %c0_54 = arith.constant 0 : index
    %c128 = arith.constant 128 : index
    %89 = vector.load %arg5[%c0_54, %c128] : memref<4x768xf32, #tpu.memory_space<vmem>>, vector<4x512xf32>
    %90 = vector.broadcast %87 : vector<4x1xf32> to vector<4x512xf32>
    %91 = arith.mulf %90, %89 : vector<4x512xf32>
    %92 = arith.addf %88, %91 : vector<4x512xf32>
    %c0_55 = arith.constant 0 : index
    %c256_56 = arith.constant 256 : index
    %93 = vector.load %arg5[%c0_55, %c256_56] : memref<4x768xf32, #tpu.memory_space<vmem>>, vector<4x512xf32>
    tpu.vector_store %arg5[%c0_55, %c256_56], %92 {strides = array<i32>} : memref<4x768xf32, #tpu.memory_space<vmem>>, vector<4x512xf32>,
    %94 = vector.extract_strided_slice %2 {offsets = [0, 22], sizes = [4, 1], strides = [1, 1]} : vector<4x23xf32> to vector<4x1xf32>
    %c0_57 = arith.constant 0 : index
    %c256_58 = arith.constant 256 : index
    %95 = vector.load %arg5[%c0_57, %c256_58] : memref<4x768xf32, #tpu.memory_space<vmem>>, vector<4x512xf32>
    %c0_59 = arith.constant 0 : index
    %c0_60 = arith.constant 0 : index
    %96 = vector.load %arg5[%c0_59, %c0_60] : memref<4x768xf32, #tpu.memory_space<vmem>>, vector<4x512xf32>
    %97 = vector.broadcast %94 : vector<4x1xf32> to vector<4x512xf32>
    %98 = arith.mulf %97, %96 : vector<4x512xf32>
    %99 = arith.addf %95, %98 : vector<4x512xf32>
    %c0_61 = arith.constant 0 : index
    %c256_62 = arith.constant 256 : index
    %100 = vector.load %arg5[%c0_61, %c256_62] : memref<4x768xf32, #tpu.memory_space<vmem>>, vector<4x512xf32>
    tpu.vector_store %arg5[%c0_61, %c256_62], %99 {strides = array<i32>} : memref<4x768xf32, #tpu.memory_space<vmem>>, vector<4x512xf32>,
    %c0_63 = arith.constant 0 : index
    %c383 = arith.constant 383 : index
    %101 = vector.load %arg5[%c0_63, %c383] : memref<4x768xf32, #tpu.memory_space<vmem>>, vector<4x384xf32>
    %c0_64 = arith.constant 0 : index
    %c376 = arith.constant 376 : index
    %102 = vector.load %arg5[%c0_64, %c376] : memref<4x768xf32, #tpu.memory_space<vmem>>, vector<4x384xf32>
    %103 = vector.broadcast %5 : vector<4x1xf32> to vector<4x384xf32>
    %104 = arith.mulf %103, %102 : vector<4x384xf32>
    %105 = arith.subf %101, %104 : vector<4x384xf32>
    %106 = vector.broadcast %3 : vector<4x1xf32> to vector<4x384xf32>
    %107 = arith.mulf %106, %105 : vector<4x384xf32>
    %108 = vector.broadcast %4 : vector<4x1xf32> to vector<4x384xf32>
    %109 = arith.addf %108, %107 : vector<4x384xf32>
    %110 = math.rsqrt %109 : vector<4x384xf32>
    %111 = vector.extract_strided_slice %30 {offsets = [0, 128], sizes = [4, 128], strides = [1, 1]} : vector<4x256xf32> to vector<4x128xf32>
    %112 = tpu.concatenate %111, %31 in 1 : vector<4x128xf32>, vector<4x256xf32> -> vector<4x384xf32>
    %113 = arith.mulf %112, %110 : vector<4x384xf32>
    %114 = vector.extract_strided_slice %109 {offsets = [0, 128], sizes = [4, 256], strides = [1, 1]} : vector<4x384xf32> to vector<4x256xf32>
    %115 = vector.extract_strided_slice %110 {offsets = [0, 128], sizes = [4, 256], strides = [1, 1]} : vector<4x384xf32> to vector<4x256xf32>
    %116 = arith.mulf %114, %115 : vector<4x256xf32>
    %cst_65 = arith.constant 0.000000e+00 : f32
    %117 = vector.broadcast %cst_65 : f32 to vector<16x384xf32>
    %cst_66 = arith.constant 0.000000e+00 : f32
    %118 = vector.broadcast %cst_66 : f32 to vector<16x384xf32>
    %119 = vector.extract_strided_slice %113 {offsets = [0, 0], sizes = [1, 384], strides = [1, 1]} : vector<4x384xf32> to vector<1x384xf32>
    %120 = vector.shape_cast %8 : vector<16x1xi1> to vector<16x1xi1>
    %121 = vector.broadcast %120 : vector<16x1xi1> to vector<16x384xi1>
    %122 = vector.shape_cast %119 : vector<1x384xf32> to vector<1x384xf32>
    %123 = vector.broadcast %122 : vector<1x384xf32> to vector<16x384xf32>
    %124 = arith.select %121, %123, %117 : vector<16x384xi1>, vector<16x384xf32>
    %125 = vector.shape_cast %20 : vector<16x1xi1> to vector<16x1xi1>
    %126 = vector.broadcast %125 : vector<16x1xi1> to vector<16x384xi1>
    %127 = vector.shape_cast %119 : vector<1x384xf32> to vector<1x384xf32>
    %128 = vector.broadcast %127 : vector<1x384xf32> to vector<16x384xf32>
    %129 = arith.select %126, %128, %118 : vector<16x384xi1>, vector<16x384xf32>
    %130 = vector.extract_strided_slice %113 {offsets = [1, 0], sizes = [1, 384], strides = [1, 1]} : vector<4x384xf32> to vector<1x384xf32>
    %131 = vector.shape_cast %11 : vector<16x1xi1> to vector<16x1xi1>
    %132 = vector.broadcast %131 : vector<16x1xi1> to vector<16x384xi1>
    %133 = vector.shape_cast %130 : vector<1x384xf32> to vector<1x384xf32>
    %134 = vector.broadcast %133 : vector<1x384xf32> to vector<16x384xf32>
    %135 = arith.select %132, %134, %124 : vector<16x384xi1>, vector<16x384xf32>
    %136 = vector.shape_cast %23 : vector<16x1xi1> to vector<16x1xi1>
    %137 = vector.broadcast %136 : vector<16x1xi1> to vector<16x384xi1>
    %138 = vector.shape_cast %130 : vector<1x384xf32> to vector<1x384xf32>
    %139 = vector.broadcast %138 : vector<1x384xf32> to vector<16x384xf32>
    %140 = arith.select %137, %139, %129 : vector<16x384xi1>, vector<16x384xf32>
    %141 = vector.extract_strided_slice %113 {offsets = [2, 0], sizes = [1, 384], strides = [1, 1]} : vector<4x384xf32> to vector<1x384xf32>
    %142 = vector.shape_cast %14 : vector<16x1xi1> to vector<16x1xi1>
    %143 = vector.broadcast %142 : vector<16x1xi1> to vector<16x384xi1>
    %144 = vector.shape_cast %141 : vector<1x384xf32> to vector<1x384xf32>
    %145 = vector.broadcast %144 : vector<1x384xf32> to vector<16x384xf32>
    %146 = arith.select %143, %145, %135 : vector<16x384xi1>, vector<16x384xf32>
    %147 = vector.shape_cast %26 : vector<16x1xi1> to vector<16x1xi1>
    %148 = vector.broadcast %147 : vector<16x1xi1> to vector<16x384xi1>
    %149 = vector.shape_cast %141 : vector<1x384xf32> to vector<1x384xf32>
    %150 = vector.broadcast %149 : vector<1x384xf32> to vector<16x384xf32>
    %151 = arith.select %148, %150, %140 : vector<16x384xi1>, vector<16x384xf32>
    %152 = vector.extract_strided_slice %113 {offsets = [3, 0], sizes = [1, 384], strides = [1, 1]} : vector<4x384xf32> to vector<1x384xf32>
    %153 = vector.shape_cast %17 : vector<16x1xi1> to vector<16x1xi1>
    %154 = vector.broadcast %153 : vector<16x1xi1> to vector<16x384xi1>
    %155 = vector.shape_cast %152 : vector<1x384xf32> to vector<1x384xf32>
    %156 = vector.broadcast %155 : vector<1x384xf32> to vector<16x384xf32>
    %157 = arith.select %154, %156, %146 : vector<16x384xi1>, vector<16x384xf32>
    %158 = vector.shape_cast %29 : vector<16x1xi1> to vector<16x1xi1>
    %159 = vector.broadcast %158 : vector<16x1xi1> to vector<16x384xi1>
    %160 = vector.shape_cast %152 : vector<1x384xf32> to vector<1x384xf32>
    %161 = vector.broadcast %160 : vector<1x384xf32> to vector<16x384xf32>
    %162 = arith.select %159, %161, %151 : vector<16x384xi1>, vector<16x384xf32>
    %cst_67 = arith.constant 0.000000e+00 : f32
    %163 = vector.broadcast %cst_67 : f32 to vector<16x256xf32>
    %c0_68 = arith.constant 0 : index
    %c0_69 = arith.constant 0 : index
    %164 = vector.load %arg6[%c0_68, %c0_69] : memref<16x640xf32, #tpu.memory_space<vmem>>, vector<16x256xf32>
    tpu.vector_store %arg6[%c0_68, %c0_69], %163 {strides = array<i32>} : memref<16x640xf32, #tpu.memory_space<vmem>>, vector<16x256xf32>,
    %165 = arith.mulf %157, %162 : vector<16x384xf32>
    %c0_70 = arith.constant 0 : index
    %c256_71 = arith.constant 256 : index
    %166 = vector.load %arg6[%c0_70, %c256_71] : memref<16x640xf32, #tpu.memory_space<vmem>>, vector<16x384xf32>
    tpu.vector_store %arg6[%c0_70, %c256_71], %165 {strides = array<i32>} : memref<16x640xf32, #tpu.memory_space<vmem>>, vector<16x384xf32>,
    %c0_72 = arith.constant 0 : index
    %c256_73 = arith.constant 256 : index
    %167 = vector.load %arg6[%c0_72, %c256_73] : memref<16x640xf32, #tpu.memory_space<vmem>>, vector<16x384xf32>
    %c0_74 = arith.constant 0 : index
    %c255_75 = arith.constant 255 : index
    %168 = vector.load %arg6[%c0_74, %c255_75] : memref<16x640xf32, #tpu.memory_space<vmem>>, vector<16x384xf32>
    %cst_76 = arith.constant 0.96142137 : f32
    %169 = vector.broadcast %cst_76 : f32 to vector<16x384xf32>
    %170 = arith.mulf %169, %168 : vector<16x384xf32>
    %171 = arith.addf %167, %170 : vector<16x384xf32>
    %c0_77 = arith.constant 0 : index
    %c256_78 = arith.constant 256 : index
    %172 = vector.load %arg6[%c0_77, %c256_78] : memref<16x640xf32, #tpu.memory_space<vmem>>, vector<16x384xf32>
    tpu.vector_store %arg6[%c0_77, %c256_78], %171 {strides = array<i32>} : memref<16x640xf32, #tpu.memory_space<vmem>>, vector<16x384xf32>,
    %c0_79 = arith.constant 0 : index
    %c256_80 = arith.constant 256 : index
    %173 = vector.load %arg6[%c0_79, %c256_80] : memref<16x640xf32, #tpu.memory_space<vmem>>, vector<16x384xf32>
    %c0_81 = arith.constant 0 : index
    %c254_82 = arith.constant 254 : index
    %174 = vector.load %arg6[%c0_81, %c254_82] : memref<16x640xf32, #tpu.memory_space<vmem>>, vector<16x384xf32>
    %cst_83 = arith.constant 9.243310e-01 : f32
    %175 = vector.broadcast %cst_83 : f32 to vector<16x384xf32>
    %176 = arith.mulf %175, %174 : vector<16x384xf32>
    %177 = arith.addf %173, %176 : vector<16x384xf32>
    %c0_84 = arith.constant 0 : index
    %c256_85 = arith.constant 256 : index
    %178 = vector.load %arg6[%c0_84, %c256_85] : memref<16x640xf32, #tpu.memory_space<vmem>>, vector<16x384xf32>
    tpu.vector_store %arg6[%c0_84, %c256_85], %177 {strides = array<i32>} : memref<16x640xf32, #tpu.memory_space<vmem>>, vector<16x384xf32>,
    %c0_86 = arith.constant 0 : index
    %c256_87 = arith.constant 256 : index
    %179 = vector.load %arg6[%c0_86, %c256_87] : memref<16x640xf32, #tpu.memory_space<vmem>>, vector<16x384xf32>
    %c0_88 = arith.constant 0 : index
    %c252_89 = arith.constant 252 : index
    %180 = vector.load %arg6[%c0_88, %c252_89] : memref<16x640xf32, #tpu.memory_space<vmem>>, vector<16x384xf32>
    %cst_90 = arith.constant 0.854387819 : f32
    %181 = vector.broadcast %cst_90 : f32 to vector<16x384xf32>
    %182 = arith.mulf %181, %180 : vector<16x384xf32>
    %183 = arith.addf %179, %182 : vector<16x384xf32>
    %c0_91 = arith.constant 0 : index
    %c256_92 = arith.constant 256 : index
    %184 = vector.load %arg6[%c0_91, %c256_92] : memref<16x640xf32, #tpu.memory_space<vmem>>, vector<16x384xf32>
    tpu.vector_store %arg6[%c0_91, %c256_92], %183 {strides = array<i32>} : memref<16x640xf32, #tpu.memory_space<vmem>>, vector<16x384xf32>,
    %c0_93 = arith.constant 0 : index
    %c256_94 = arith.constant 256 : index
    %185 = vector.load %arg6[%c0_93, %c256_94] : memref<16x640xf32, #tpu.memory_space<vmem>>, vector<16x384xf32>
    %c0_95 = arith.constant 0 : index
    %c248_96 = arith.constant 248 : index
    %186 = vector.load %arg6[%c0_95, %c248_96] : memref<16x640xf32, #tpu.memory_space<vmem>>, vector<16x384xf32>
    %cst_97 = arith.constant 0.729978561 : f32
    %187 = vector.broadcast %cst_97 : f32 to vector<16x384xf32>
    %188 = arith.mulf %187, %186 : vector<16x384xf32>
    %189 = arith.addf %185, %188 : vector<16x384xf32>
    %c0_98 = arith.constant 0 : index
    %c256_99 = arith.constant 256 : index
    %190 = vector.load %arg6[%c0_98, %c256_99] : memref<16x640xf32, #tpu.memory_space<vmem>>, vector<16x384xf32>
    tpu.vector_store %arg6[%c0_98, %c256_99], %189 {strides = array<i32>} : memref<16x640xf32, #tpu.memory_space<vmem>>, vector<16x384xf32>,
    %c0_100 = arith.constant 0 : index
    %c256_101 = arith.constant 256 : index
    %191 = vector.load %arg6[%c0_100, %c256_101] : memref<16x640xf32, #tpu.memory_space<vmem>>, vector<16x384xf32>
    %c0_102 = arith.constant 0 : index
    %c240_103 = arith.constant 240 : index
    %192 = vector.load %arg6[%c0_102, %c240_103] : memref<16x640xf32, #tpu.memory_space<vmem>>, vector<16x384xf32>
    %cst_104 = arith.constant 0.532868683 : f32
    %193 = vector.broadcast %cst_104 : f32 to vector<16x384xf32>
    %194 = arith.mulf %193, %192 : vector<16x384xf32>
    %195 = arith.addf %191, %194 : vector<16x384xf32>
    %c0_105 = arith.constant 0 : index
    %c256_106 = arith.constant 256 : index
    %196 = vector.load %arg6[%c0_105, %c256_106] : memref<16x640xf32, #tpu.memory_space<vmem>>, vector<16x384xf32>
    tpu.vector_store %arg6[%c0_105, %c256_106], %195 {strides = array<i32>} : memref<16x640xf32, #tpu.memory_space<vmem>>, vector<16x384xf32>,
    %c0_107 = arith.constant 0 : index
    %c256_108 = arith.constant 256 : index
    %197 = vector.load %arg6[%c0_107, %c256_108] : memref<16x640xf32, #tpu.memory_space<vmem>>, vector<16x384xf32>
    %c0_109 = arith.constant 0 : index
    %c224_110 = arith.constant 224 : index
    %198 = vector.load %arg6[%c0_109, %c224_110] : memref<16x640xf32, #tpu.memory_space<vmem>>, vector<16x384xf32>
    %cst_111 = arith.constant 0.283949018 : f32
    %199 = vector.broadcast %cst_111 : f32 to vector<16x384xf32>
    %200 = arith.mulf %199, %198 : vector<16x384xf32>
    %201 = arith.addf %197, %200 : vector<16x384xf32>
    %c0_112 = arith.constant 0 : index
    %c256_113 = arith.constant 256 : index
    %202 = vector.load %arg6[%c0_112, %c256_113] : memref<16x640xf32, #tpu.memory_space<vmem>>, vector<16x384xf32>
    tpu.vector_store %arg6[%c0_112, %c256_113], %201 {strides = array<i32>} : memref<16x640xf32, #tpu.memory_space<vmem>>, vector<16x384xf32>,
    %c0_114 = arith.constant 0 : index
    %c256_115 = arith.constant 256 : index
    %203 = vector.load %arg6[%c0_114, %c256_115] : memref<16x640xf32, #tpu.memory_space<vmem>>, vector<16x384xf32>
    %c0_116 = arith.constant 0 : index
    %c192_117 = arith.constant 192 : index
    %204 = vector.load %arg6[%c0_116, %c192_117] : memref<16x640xf32, #tpu.memory_space<vmem>>, vector<16x384xf32>
    %cst_118 = arith.constant 0.0806270465 : f32
    %205 = vector.broadcast %cst_118 : f32 to vector<16x384xf32>
    %206 = arith.mulf %205, %204 : vector<16x384xf32>
    %207 = arith.addf %203, %206 : vector<16x384xf32>
    %c0_119 = arith.constant 0 : index
    %c256_120 = arith.constant 256 : index
    %208 = vector.load %arg6[%c0_119, %c256_120] : memref<16x640xf32, #tpu.memory_space<vmem>>, vector<16x384xf32>
    tpu.vector_store %arg6[%c0_119, %c256_120], %207 {strides = array<i32>} : memref<16x640xf32, #tpu.memory_space<vmem>>, vector<16x384xf32>,
    %c0_121 = arith.constant 0 : index
    %c256_122 = arith.constant 256 : index
    %209 = vector.load %arg6[%c0_121, %c256_122] : memref<16x640xf32, #tpu.memory_space<vmem>>, vector<16x384xf32>
    %c0_123 = arith.constant 0 : index
    %c128_124 = arith.constant 128 : index
    %210 = vector.load %arg6[%c0_123, %c128_124] : memref<16x640xf32, #tpu.memory_space<vmem>>, vector<16x384xf32>
    %cst_125 = arith.constant 0.00650072051 : f32
    %211 = vector.broadcast %cst_125 : f32 to vector<16x384xf32>
    %212 = arith.mulf %211, %210 : vector<16x384xf32>
    %213 = arith.addf %209, %212 : vector<16x384xf32>
    %c0_126 = arith.constant 0 : index
    %c256_127 = arith.constant 256 : index
    %214 = vector.load %arg6[%c0_126, %c256_127] : memref<16x640xf32, #tpu.memory_space<vmem>>, vector<16x384xf32>
    tpu.vector_store %arg6[%c0_126, %c256_127], %213 {strides = array<i32>} : memref<16x640xf32, #tpu.memory_space<vmem>>, vector<16x384xf32>,
    %c0_128 = arith.constant 0 : index
    %c256_129 = arith.constant 256 : index
    %215 = vector.load %arg6[%c0_128, %c256_129] : memref<16x640xf32, #tpu.memory_space<vmem>>, vector<16x384xf32>
    %c0_130 = arith.constant 0 : index
    %c0_131 = arith.constant 0 : index
    %216 = vector.load %arg6[%c0_130, %c0_131] : memref<16x640xf32, #tpu.memory_space<vmem>>, vector<16x384xf32>
    %cst_132 = arith.constant 4.22593694E-5 : f32
    %217 = vector.broadcast %cst_132 : f32 to vector<16x384xf32>
    %218 = arith.mulf %217, %216 : vector<16x384xf32>
    %219 = arith.addf %215, %218 : vector<16x384xf32>
    %c0_133 = arith.constant 0 : index
    %c256_134 = arith.constant 256 : index
    %220 = vector.load %arg6[%c0_133, %c256_134] : memref<16x640xf32, #tpu.memory_space<vmem>>, vector<16x384xf32>
    tpu.vector_store %arg6[%c0_133, %c256_134], %219 {strides = array<i32>} : memref<16x640xf32, #tpu.memory_space<vmem>>, vector<16x384xf32>,
    %c0_135 = arith.constant 0 : index
    %c383_136 = arith.constant 383 : index
    %221 = vector.load %arg6[%c0_135, %c383_136] : memref<16x640xf32, #tpu.memory_space<vmem>>, vector<16x256xf32>
    %c0_137 = arith.constant 0 : index
    %c376_138 = arith.constant 376 : index
    %222 = vector.load %arg6[%c0_137, %c376_138] : memref<16x640xf32, #tpu.memory_space<vmem>>, vector<16x256xf32>
    %cst_139 = arith.constant 0.759270131 : f32
    %223 = vector.broadcast %cst_139 : f32 to vector<16x256xf32>
    %224 = arith.mulf %223, %222 : vector<16x256xf32>
    %225 = arith.subf %221, %224 : vector<16x256xf32>
    %cst_140 = arith.constant 0.00999999977 : f32
    %226 = vector.broadcast %cst_140 : f32 to vector<16x1xf32>
    %227 = arith.mulf %226, %1 : vector<16x1xf32>
    %cst_141 = arith.constant 0.109414242 : f32
    %228 = vector.broadcast %cst_141 : f32 to vector<16x256xf32>
    %229 = arith.mulf %228, %225 : vector<16x256xf32>
    %230 = vector.broadcast %227 : vector<16x1xf32> to vector<16x256xf32>
    %231 = arith.addf %230, %229 : vector<16x256xf32>
    %232 = tpu.iota {dimensions = array<i32: 0>} : vector<4x1xi32>
    %cst_142 = arith.constant 0.000000e+00 : f32
    %233 = vector.broadcast %cst_142 : f32 to vector<4x256xf32>
    %c0_i32 = arith.constant 0 : i32
    %234 = vector.broadcast %c0_i32 : i32 to vector<4x1xi32>
    %235 = arith.cmpi eq, %232, %234 : vector<4x1xi32>
    %236 = vector.extract_strided_slice %231 {offsets = [0, 0], sizes = [1, 256], strides = [1, 1]} : vector<16x256xf32> to vector<1x256xf32>
    %237 = vector.shape_cast %235 : vector<4x1xi1> to vector<4x1xi1>
    %238 = vector.broadcast %237 : vector<4x1xi1> to vector<4x256xi1>
    %239 = vector.shape_cast %236 : vector<1x256xf32> to vector<1x256xf32>
    %240 = vector.broadcast %239 : vector<1x256xf32> to vector<4x256xf32>
    %241 = arith.select %238, %240, %233 : vector<4x256xi1>, vector<4x256xf32>
    %c1_i32 = arith.constant 1 : i32
    %242 = vector.broadcast %c1_i32 : i32 to vector<4x1xi32>
    %243 = arith.cmpi eq, %232, %242 : vector<4x1xi32>
    %244 = vector.extract_strided_slice %231 {offsets = [5, 0], sizes = [1, 256], strides = [1, 1]} : vector<16x256xf32> to vector<1x256xf32>
    %245 = vector.shape_cast %243 : vector<4x1xi1> to vector<4x1xi1>
    %246 = vector.broadcast %245 : vector<4x1xi1> to vector<4x256xi1>
    %247 = vector.shape_cast %244 : vector<1x256xf32> to vector<1x256xf32>
    %248 = vector.broadcast %247 : vector<1x256xf32> to vector<4x256xf32>
    %249 = arith.select %246, %248, %241 : vector<4x256xi1>, vector<4x256xf32>
    %c2_i32 = arith.constant 2 : i32
    %250 = vector.broadcast %c2_i32 : i32 to vector<4x1xi32>
    %251 = arith.cmpi eq, %232, %250 : vector<4x1xi32>
    %252 = vector.extract_strided_slice %231 {offsets = [10, 0], sizes = [1, 256], strides = [1, 1]} : vector<16x256xf32> to vector<1x256xf32>
    %253 = vector.shape_cast %251 : vector<4x1xi1> to vector<4x1xi1>
    %254 = vector.broadcast %253 : vector<4x1xi1> to vector<4x256xi1>
    %255 = vector.shape_cast %252 : vector<1x256xf32> to vector<1x256xf32>
    %256 = vector.broadcast %255 : vector<1x256xf32> to vector<4x256xf32>
    %257 = arith.select %254, %256, %249 : vector<4x256xi1>, vector<4x256xf32>
    %c3_i32 = arith.constant 3 : i32
    %258 = vector.broadcast %c3_i32 : i32 to vector<4x1xi32>
    %259 = arith.cmpi eq, %232, %258 : vector<4x1xi32>
    %260 = vector.extract_strided_slice %231 {offsets = [15, 0], sizes = [1, 256], strides = [1, 1]} : vector<16x256xf32> to vector<1x256xf32>
    %261 = vector.shape_cast %259 : vector<4x1xi1> to vector<4x1xi1>
    %262 = vector.broadcast %261 : vector<4x1xi1> to vector<4x256xi1>
    %263 = vector.shape_cast %260 : vector<1x256xf32> to vector<1x256xf32>
    %264 = vector.broadcast %263 : vector<1x256xf32> to vector<4x256xf32>
    %265 = arith.select %262, %264, %257 : vector<4x256xi1>, vector<4x256xf32>
    %cst_143 = arith.constant 1.000000e-30 : f32
    %266 = vector.broadcast %cst_143 : f32 to vector<4x256xf32>
    %267 = arith.maximumf %265, %266 : vector<4x256xf32>
    %268 = math.rsqrt %267 : vector<4x256xf32>
    %269 = arith.mulf %116, %268 : vector<4x256xf32>
    %cst_144 = arith.constant 0.000000e+00 : f32
    %270 = vector.broadcast %cst_144 : f32 to vector<16x256xf32>
    %cst_145 = arith.constant 0.000000e+00 : f32
    %271 = vector.broadcast %cst_145 : f32 to vector<16x256xf32>
    %272 = vector.extract_strided_slice %269 {offsets = [0, 0], sizes = [1, 256], strides = [1, 1]} : vector<4x256xf32> to vector<1x256xf32>
    %273 = vector.shape_cast %8 : vector<16x1xi1> to vector<16x1xi1>
    %274 = vector.broadcast %273 : vector<16x1xi1> to vector<16x256xi1>
    %275 = vector.shape_cast %272 : vector<1x256xf32> to vector<1x256xf32>
    %276 = vector.broadcast %275 : vector<1x256xf32> to vector<16x256xf32>
    %277 = arith.select %274, %276, %270 : vector<16x256xi1>, vector<16x256xf32>
    %278 = vector.shape_cast %20 : vector<16x1xi1> to vector<16x1xi1>
    %279 = vector.broadcast %278 : vector<16x1xi1> to vector<16x256xi1>
    %280 = vector.shape_cast %272 : vector<1x256xf32> to vector<1x256xf32>
    %281 = vector.broadcast %280 : vector<1x256xf32> to vector<16x256xf32>
    %282 = arith.select %279, %281, %271 : vector<16x256xi1>, vector<16x256xf32>
    %283 = vector.extract_strided_slice %269 {offsets = [1, 0], sizes = [1, 256], strides = [1, 1]} : vector<4x256xf32> to vector<1x256xf32>
    %284 = vector.shape_cast %11 : vector<16x1xi1> to vector<16x1xi1>
    %285 = vector.broadcast %284 : vector<16x1xi1> to vector<16x256xi1>
    %286 = vector.shape_cast %283 : vector<1x256xf32> to vector<1x256xf32>
    %287 = vector.broadcast %286 : vector<1x256xf32> to vector<16x256xf32>
    %288 = arith.select %285, %287, %277 : vector<16x256xi1>, vector<16x256xf32>
    %289 = vector.shape_cast %23 : vector<16x1xi1> to vector<16x1xi1>
    %290 = vector.broadcast %289 : vector<16x1xi1> to vector<16x256xi1>
    %291 = vector.shape_cast %283 : vector<1x256xf32> to vector<1x256xf32>
    %292 = vector.broadcast %291 : vector<1x256xf32> to vector<16x256xf32>
    %293 = arith.select %290, %292, %282 : vector<16x256xi1>, vector<16x256xf32>
    %294 = vector.extract_strided_slice %269 {offsets = [2, 0], sizes = [1, 256], strides = [1, 1]} : vector<4x256xf32> to vector<1x256xf32>
    %295 = vector.shape_cast %14 : vector<16x1xi1> to vector<16x1xi1>
    %296 = vector.broadcast %295 : vector<16x1xi1> to vector<16x256xi1>
    %297 = vector.shape_cast %294 : vector<1x256xf32> to vector<1x256xf32>
    %298 = vector.broadcast %297 : vector<1x256xf32> to vector<16x256xf32>
    %299 = arith.select %296, %298, %288 : vector<16x256xi1>, vector<16x256xf32>
    %300 = vector.shape_cast %26 : vector<16x1xi1> to vector<16x1xi1>
    %301 = vector.broadcast %300 : vector<16x1xi1> to vector<16x256xi1>
    %302 = vector.shape_cast %294 : vector<1x256xf32> to vector<1x256xf32>
    %303 = vector.broadcast %302 : vector<1x256xf32> to vector<16x256xf32>
    %304 = arith.select %301, %303, %293 : vector<16x256xi1>, vector<16x256xf32>
    %305 = vector.extract_strided_slice %269 {offsets = [3, 0], sizes = [1, 256], strides = [1, 1]} : vector<4x256xf32> to vector<1x256xf32>
    %306 = vector.shape_cast %17 : vector<16x1xi1> to vector<16x1xi1>
    %307 = vector.broadcast %306 : vector<16x1xi1> to vector<16x256xi1>
    %308 = vector.shape_cast %305 : vector<1x256xf32> to vector<1x256xf32>
    %309 = vector.broadcast %308 : vector<1x256xf32> to vector<16x256xf32>
    %310 = arith.select %307, %309, %299 : vector<16x256xi1>, vector<16x256xf32>
    %311 = vector.shape_cast %29 : vector<16x1xi1> to vector<16x1xi1>
    %312 = vector.broadcast %311 : vector<16x1xi1> to vector<16x256xi1>
    %313 = vector.shape_cast %305 : vector<1x256xf32> to vector<1x256xf32>
    %314 = vector.broadcast %313 : vector<1x256xf32> to vector<16x256xf32>
    %315 = arith.select %312, %314, %304 : vector<16x256xi1>, vector<16x256xf32>
    %316 = arith.mulf %231, %310 : vector<16x256xf32>
    %317 = arith.mulf %316, %315 : vector<16x256xf32>
    %c0_146 = arith.constant 0 : index
    %c0_147 = arith.constant 0 : index
    %318 = vector.load %arg4[%c0_146, %c0_147] : memref<16x256xf32, #tpu.memory_space<vmem>>, vector<16x256xf32>
    tpu.vector_store %arg4[%c0_146, %c0_147], %317 {strides = array<i32>} : memref<16x256xf32, #tpu.memory_space<vmem>>, vector<16x256xf32>,
    return
  }
  func.func @transform_0(%arg0: i32) -> (i32, i32) {
    %c0_i32 = arith.constant 0 : i32
    %c0_i32_0 = arith.constant 0 : i32
    return %c0_i32, %arg0 : i32, i32
  }
  func.func @transform_1(%arg0: i32) -> (i32, i32) {
    %c1_i32 = arith.constant 1 : i32
    %0 = arith.addi %arg0, %c1_i32 : i32
    %c0_i32 = arith.constant 0 : i32
    %c0_i32_0 = arith.constant 0 : i32
    return %c0_i32, %0 : i32, i32
  }
  func.func @transform_2(%arg0: i32) -> (i32, i32) {
    %c0_i32 = arith.constant 0 : i32
    %c0_i32_0 = arith.constant 0 : i32
    %c0_i32_1 = arith.constant 0 : i32
    return %c0_i32, %c0_i32_0 : i32, i32
  }
  func.func @transform_3(%arg0: i32) -> (i32, i32) {
    %c0_i32 = arith.constant 0 : i32
    %c0_i32_0 = arith.constant 0 : i32
    return %c0_i32, %arg0 : i32, i32
  }
}

</mosaic_0001>

<bundles_post_ra>
// kernel: tpu_custom_call.1
= control target key start
LH: loop header
LB: loop body
LE: loop exit
PB: predicated region body
PF: predicated region fallthrough
CT: control target
= control target key end

     0   :  { %8 = vsyncpa [#allocation5], 0  ;;  %s2522_s0 = inlined_call_operand.hbm [shape: f32[4,512], index: 0, kind: input, shape index: {}]   ;;  %s2523_s1 = inlined_call_operand.hbm [shape: f32[4,512], index: 1, kind: input, shape index: {}]   ;;  %s2524_s2 = inlined_call_operand.hbm [shape: f32[16,23], index: 2, kind: input, shape index: {}]   ;;  %s2525_s3 = inlined_call_operand.hbm [shape: f32[16,256], index: 3, kind: output, shape index: {}]  }
   0x1   :  { %9 = vsyncpa [#allocation8], 0  ;;  %s1650_s14 = scalar_lea.hbm %s2523_s1, 8 }
   0x2   :  { %10 = vsyncpa [#allocation6], 0  ;;  %s31_s15 = sshll.u32 %s1650_s14, 4  ;;  %s1869_s16 = smov [#allocation7]   ;;  %s32_s15 = int_to_ptr.hbm [resolvable:$true] %s31_s15 }
   0x3   :  { %s33_s17 = sshll.u32 %s1869_s16, 4  ;;  %s16_s20 = sshll.u32 %s2522_s0, 4  ;;  %s34_s17 = int_to_ptr.vmem [resolvable:$true] %s33_s17  ;;  %s17_s20 = int_to_ptr.hbm [resolvable:$true] %s16_s20 }
   0x4   :  { %36 = dma.hbm_to_vmem [thread:$0]  %s32_s15, 128, %s34_s17, [#allocation8]  }
   0x5   :  { %s1870_s21 = smov [#allocation4]   ;;  %s41_s25 = sshll.u32 %s2524_s2, 4  ;;  %s42_s25 = int_to_ptr.hbm [resolvable:$true] %s41_s25 }
   0x6   :  { %s18_s22 = sshll.u32 %s1870_s21, 4  ;;  %s1871_s1 = smov [#allocation9]   ;;  %s19_s22 = int_to_ptr.vmem [resolvable:$true] %s18_s22 }
   0x7   :  { %21 = dma.hbm_to_vmem [thread:$0]  %s17_s20, 128, %s19_s22, [#allocation5]  }
   0x8   :  { %s43_s26 = sshll.u32 %s1871_s1, 4  ;;  %s1872_s27 = smov 128   ;;  %s44_s26 = int_to_ptr.vmem [resolvable:$true] %s43_s26 }
   0x9   :  { %s1873_s28 = smov 8  }
   0xa   :  { %49 = dma.hbm_to_vmem [thread:$0]  %s42_s25, 256, %s44_s26, [#allocation8], %s1872_s27, %s1872_s27, %s1873_s28  }
   0xb   :  { %1863 = dma.done.wait [#allocation5], 128  }
   0xc   :  { %1864 = vsyncadd [#allocation5], 4294967168 }
   0xd   :  { %1865 = dma.done.wait [#allocation8], 384  }
   0xe   :  { %1866 = vsyncadd [#allocation8], 4294966912  ;;  %v1874_v0 = vmov 0.0   ;;  %v1875_v1 = vmov 14   ;;  %v1937_v2 = vld [vmem:[#allocation4] sm:$0xff]  ;;  %v1939_v3 = vld [vmem:[#allocation7] sm:$0xff] }
   0xf   :  { %70 = vst [vmem:[#allocation2] sm:$0xff] %v1874_v0  ;;  %1688 = vset.pattern.permute.xlu2 %v1875_v1  ;;  %v1941_v4 = vld [vmem:[#allocation9] sm:$0xff]  ;;  %v71_v5 = vmul.f32 %v1937_v2, %v1937_v2  ;;  %v73_v6 = vmul.f32 %v1939_v3, %v1939_v3  ;;  %s1876_s0 = smov 1   ;;  %v1877_v18 = vmov 15   ;;  %vm2533_vm0 = vcmask 7168   ;;  %s1878_s2 = smov 2  }
  0x10   :  { %82 = vperm.xlu2 %1688, %v1941_v4   ;;  %1689 = vset.pattern.permute.xlu1 %v1877_v18  ;;  %vm127_vm1 = vcmask 1043456   ;;  %v1879_v47 = vmov 16   ;;  %vm2532_vm2 = vcmask 15360   ;;  %s1880_s29 = smov 4   ;;  %vm2531_vm3 = vcmask 31744   ;;  %s1883_s30 = smov 16  }
  0x11   :  { %72 = vst [vmem:[#allocation2 + $0x8] sm:$0xff] %v71_v5  ;;  %vm2530_vm4 = vcmask 64512   ;;  %vm2529_vm5 = vcmask 130048   ;;  %s1885_s4 = smov 32   ;;  %vm2528_vm6 = vcmask 261120   ;;  %s1889_s5 = smov 64  }
  0x12   :  { %74 = vst [vmem:[#allocation2 + $0x10] sm:$0xff] %v73_v6  ;;  %vm2527_vm7 = vcmask 523264   ;;  %vm66_vm8 = vcmp.gt.f32.partialorder %v1941_v4, 0.5  ;;  %s1895_s6 = smov 127   ;;  %vm2526_vm9 = vcmask 1039360   ;;  %s1903_s7 = smov 7  }
  0x13   :  { %s1636_s10 = sshll.u32 %s2525_s3, 4  ;;  %s1904_s11 = smov [#allocation10]   ;;  %s1637_s10 = int_to_ptr.hbm [resolvable:$true] %s1636_s10 }
  0x14   :  { %s1634_s12 = sshll.u32 %s1904_s11, 4  ;;  %s1905_s13 = smov 256   ;;  %s1635_s12 = int_to_ptr.vmem [resolvable:$true] %s1634_s12 }
  0x18   :  { %v77_v7 = vld [vmem:[#allocation2 + $0x4] sm:$0xff] }
  0x19   :  { %v78_v8 = vld [vmem:[#allocation2 + $0xc] sm:$0xff]  ;;  %88 = vst [vmem:[#allocation1] ss:$2 sm:$0xff] %v77_v7  ;;  %v79_v9 = vld [vmem:[#allocation2 + $0x14] sm:$0xf] }
  0x1a   :  { %90 = vst [vmem:[#allocation1 + $0x10] ss:$2 sm:$0xff] %v78_v8 }
  0x1b   :  { %92 = vst [vmem:[#allocation1 + $0x20] ss:$2 sm:$0xff] %v79_v9 }
  0x20   :  { %v94_v10 = vld.sshfl [vmem:[#allocation1 + $0x8] sm:$0xff pattern:$0x75316420]  ;;  %v93_v11 = vld.sshfl [vmem:[#allocation1] sm:$0xff pattern:$0x75316420] }
  0x21   :  { %v96_v12 = vld.sshfl [vmem:[#allocation1 + $0x18] sm:$0xff pattern:$0x75316420]  ;;  %100 = vrot.lane.b32.xlu0 %v94_v10, %s1876_s0  ;;  %98 = vrot.lane.b32.xlu2 %v93_v11, %s1876_s0  ;;  %v95_v13 = vld.sshfl [vmem:[#allocation1 + $0x10] sm:$0xff pattern:$0x75316420] }
  0x22   :  { %104 = vrot.lane.b32.xlu1 %v96_v12, %s1876_s0  ;;  %v97_v14 = vld.sshfl [vmem:[#allocation1 + $0x20] sm:$0xff pattern:$0x75316420] }
  0x29   :  { %102 = vrot.lane.b32.xlu0 %v95_v13, %s1876_s0 }
  0x2a   :  { %106 = vrot.lane.b32.xlu1 %v97_v14, %s1876_s0 }
  0x6a   :  { %v83_v15 = vpop.permute.xlu2 %82 }
  0x7b   :  { %v99_v19 = vpop.permute.xlu2 %98 }
  0x93   :  { %v101_v16 = vpop.permute.xlu0 %100 }
  0x94   :  { %v105_v17 = vpop.permute.xlu1 %104  ;;  %v109_v21 = vsel %vm2533_vm0, %v99_v19, %v101_v16 }
  0x95   :  { %v117_v28 = vmul.f32 %v109_v21, %v83_v15 }
  0x9b   :  { %v103_v20 = vpop.permute.xlu0 %102 }
  0x9c   :  { %v107_v22 = vpop.permute.xlu1 %106  ;;  %v110_v23 = vsel %vm2533_vm0, %v101_v16, %v103_v20  ;;  %v111_v25 = vsel %vm2533_vm0, %v103_v20, %v105_v17  ;;  %v1881_v16 = vmov 17  }
  0x9d   :  { %v112_v24 = vsel %vm2533_vm0, %v105_v17, %v107_v22  ;;  %v118_v26 = vmul.f32 %v110_v23, %v83_v15  ;;  %v119_v31 = vmul.f32 %v111_v25, %v83_v15 }
  0x9e   :  { %v120_v27 = vmul.f32 %v112_v24, %v83_v15 }
  0x9f   :  { %v125_v29 = vrot.slane %v118_v26, 4 }
  0xa0   :  { %v126_v30 = vrot.slane %v120_v27, 4 }
  0xa1   :  { %v128_v32 = vsel %vm127_vm1, %v117_v28, %v125_v29 }
  0xa2   :  { %v129_v33 = vsel %vm127_vm1, %v119_v31, %v126_v30  ;;  %v132_v34 = vadd.f32 %v128_v32, %v71_v5 }
  0xa3   :  { %v133_v35 = vadd.f32 %v129_v33, %v73_v6 }
  0xa4   :  { %134 = vst [vmem:[#allocation2 + $0x8] sm:$0xff] %v132_v34 }
  0xa5   :  { %135 = vst [vmem:[#allocation2 + $0x10] sm:$0xff] %v133_v35 }
  0xab   :  { %v138_v36 = vld [vmem:[#allocation2 + $0x4] sm:$0xff] }
  0xac   :  { %v139_v37 = vld [vmem:[#allocation2 + $0xc] sm:$0xff]  ;;  %v140_v38 = vld [vmem:[#allocation2 + $0x14] sm:$0xf]  ;;  %148 = vst [vmem:[#allocation1] ss:$2 sm:$0xff] %v138_v36 }
  0xad   :  { %150 = vst [vmem:[#allocation1 + $0x10] ss:$2 sm:$0xff] %v139_v37 }
  0xae   :  { %152 = vst [vmem:[#allocation1 + $0x20] ss:$2 sm:$0xff] %v140_v38 }
  0xb3   :  { %v154_v39 = vld.sshfl [vmem:[#allocation1 + $0x8] sm:$0xff pattern:$0x75316420]  ;;  %v153_v43 = vld.sshfl [vmem:[#allocation1] sm:$0xff pattern:$0x75316420] }
  0xb4   :  { %v156_v40 = vld.sshfl [vmem:[#allocation1 + $0x18] sm:$0xff pattern:$0x75316420]  ;;  %v155_v41 = vld.sshfl [vmem:[#allocation1 + $0x10] sm:$0xff pattern:$0x75316420]  ;;  %160 = vrot.lane.b32.xlu0 %v154_v39, %s1878_s2 }
  0xb5   :  { %164 = vrot.lane.b32.xlu2 %v156_v40, %s1878_s2  ;;  %162 = vrot.lane.b32.xlu1 %v155_v41, %s1878_s2  ;;  %v157_v42 = vld.sshfl [vmem:[#allocation1 + $0x20] sm:$0xff pattern:$0x75316420] }
  0xbc   :  { %166 = vrot.lane.b32.xlu0 %v157_v42, %s1878_s2 }
  0xbd   :  { %142 = vperm.xlu1 %1689, %v1941_v4   ;;  %158 = vrot.lane.b32.xlu2 %v153_v43, %s1878_s2 }
  0xc5   :  { %1690 = vset.pattern.permute.xlu1 %v1879_v47 }
 0x10f   :  { %v165_v44 = vpop.permute.xlu2 %164 }
 0x117   :  { %v159_v52 = vpop.permute.xlu2 %158 }
 0x126   :  { %v161_v45 = vpop.permute.xlu0 %160 }
 0x127   :  { %v163_v46 = vpop.permute.xlu1 %162  ;;  %v169_v56 = vsel %vm2532_vm2, %v159_v52, %v161_v45 }
 0x128   :  { %v170_v49 = vsel %vm2532_vm2, %v161_v45, %v163_v46  ;;  %v171_v55 = vsel %vm2532_vm2, %v163_v46, %v165_v44  ;;  %v1882_v45 = vmov 18  }
 0x12e   :  { %v167_v48 = vpop.permute.xlu0 %166 }
 0x12f   :  { %v143_v50 = vpop.permute.xlu1 %142  ;;  %v172_v51 = vsel %vm2532_vm2, %v165_v44, %v167_v48 }
 0x130   :  { %v178_v53 = vmul.f32 %v170_v49, %v143_v50  ;;  %v180_v54 = vmul.f32 %v172_v51, %v143_v50  ;;  %v177_v57 = vmul.f32 %v169_v56, %v143_v50  ;;  %v179_v58 = vmul.f32 %v171_v55, %v143_v50 }
 0x132   :  { %v185_v59 = vrot.slane %v178_v53, 4  ;;  %v186_v60 = vrot.slane %v180_v54, 4 }
 0x134   :  { %v187_v61 = vsel %vm127_vm1, %v177_v57, %v185_v59  ;;  %v188_v62 = vsel %vm127_vm1, %v179_v58, %v186_v60 }
 0x135   :  { %v191_v63 = vadd.f32 %v187_v61, %v132_v34  ;;  %v192_v1 = vadd.f32 %v188_v62, %v133_v35 }
 0x137   :  { %193 = vst [vmem:[#allocation2 + $0x8] sm:$0xff] %v191_v63 }
 0x138   :  { %194 = vst [vmem:[#allocation2 + $0x10] sm:$0xff] %v192_v1 }
 0x13e   :  { %v197_v5 = vld [vmem:[#allocation2 + $0x4] sm:$0xff] }
 0x13f   :  { %207 = vst [vmem:[#allocation1] ss:$2 sm:$0xff] %v197_v5  ;;  %v198_v6 = vld [vmem:[#allocation2 + $0xc] sm:$0xff]  ;;  %v199_v7 = vld [vmem:[#allocation2 + $0x14] sm:$0xf] }
 0x140   :  { %209 = vst [vmem:[#allocation1 + $0x10] ss:$2 sm:$0xff] %v198_v6 }
 0x141   :  { %211 = vst [vmem:[#allocation1 + $0x20] ss:$2 sm:$0xff] %v199_v7 }
 0x146   :  { %v213_v8 = vld.sshfl [vmem:[#allocation1 + $0x8] sm:$0xff pattern:$0x75316420]  ;;  %v212_v12 = vld.sshfl [vmem:[#allocation1] sm:$0xff pattern:$0x75316420] }
 0x147   :  { %219 = vrot.lane.b32.xlu0 %v213_v8, %s1880_s29  ;;  %v215_v9 = vld.sshfl [vmem:[#allocation1 + $0x18] sm:$0xff pattern:$0x75316420]  ;;  %v214_v10 = vld.sshfl [vmem:[#allocation1 + $0x10] sm:$0xff pattern:$0x75316420] }
 0x148   :  { %223 = vrot.lane.b32.xlu2 %v215_v9, %s1880_s29  ;;  %221 = vrot.lane.b32.xlu1 %v214_v10, %s1880_s29  ;;  %v216_v11 = vld.sshfl [vmem:[#allocation1 + $0x20] sm:$0xff pattern:$0x75316420] }
 0x14f   :  { %225 = vrot.lane.b32.xlu0 %v216_v11, %s1880_s29 }
 0x150   :  { %201 = vperm.xlu1 %1690, %v1941_v4   ;;  %217 = vrot.lane.b32.xlu2 %v212_v12, %s1880_s29 }
 0x158   :  { %1691 = vset.pattern.permute.xlu1 %v1881_v16 }
 0x1a2   :  { %v224_v13 = vpop.permute.xlu2 %223 }
 0x1aa   :  { %v218_v21 = vpop.permute.xlu2 %217 }
 0x1b9   :  { %v220_v14 = vpop.permute.xlu0 %219 }
 0x1ba   :  { %v222_v15 = vpop.permute.xlu1 %221  ;;  %v228_v24 = vsel %vm2531_vm3, %v218_v21, %v220_v14 }
 0x1bb   :  { %v229_v18 = vsel %vm2531_vm3, %v220_v14, %v222_v15  ;;  %v230_v25 = vsel %vm2531_vm3, %v222_v15, %v224_v13  ;;  %v1884_v14 = vmov 19  }
 0x1c1   :  { %v226_v17 = vpop.permute.xlu0 %225 }
 0x1c2   :  { %v231_v19 = vsel %vm2531_vm3, %v224_v13, %v226_v17  ;;  %v202_v20 = vpop.permute.xlu1 %201 }
 0x1c3   :  { %v237_v22 = vmul.f32 %v229_v18, %v202_v20  ;;  %v239_v23 = vmul.f32 %v231_v19, %v202_v20  ;;  %v236_v26 = vmul.f32 %v228_v24, %v202_v20  ;;  %v238_v27 = vmul.f32 %v230_v25, %v202_v20 }
 0x1c5   :  { %v244_v28 = vrot.slane %v237_v22, 4  ;;  %v245_v29 = vrot.slane %v239_v23, 4 }
 0x1c7   :  { %v246_v30 = vsel %vm127_vm1, %v236_v26, %v244_v28  ;;  %v247_v31 = vsel %vm127_vm1, %v238_v27, %v245_v29 }
 0x1c8   :  { %v250_v32 = vadd.f32 %v246_v30, %v191_v63  ;;  %v251_v33 = vadd.f32 %v247_v31, %v192_v1 }
 0x1ca   :  { %252 = vst [vmem:[#allocation2 + $0x8] sm:$0xff] %v250_v32 }
 0x1cb   :  { %253 = vst [vmem:[#allocation2 + $0x10] sm:$0xff] %v251_v33 }
 0x1d1   :  { %v256_v34 = vld [vmem:[#allocation2 + $0x4] sm:$0xff] }
 0x1d2   :  { %v257_v35 = vld [vmem:[#allocation2 + $0xc] sm:$0xff]  ;;  %266 = vst [vmem:[#allocation1] ss:$2 sm:$0xff] %v256_v34  ;;  %v258_v36 = vld [vmem:[#allocation2 + $0x14] sm:$0xf] }
 0x1d3   :  { %268 = vst [vmem:[#allocation1 + $0x10] ss:$2 sm:$0xff] %v257_v35 }
 0x1d4   :  { %270 = vst [vmem:[#allocation1 + $0x20] ss:$2 sm:$0xff] %v258_v36 }
 0x1d9   :  { %v272_v37 = vld.sshfl [vmem:[#allocation1 + $0x8] sm:$0xff pattern:$0x75316420]  ;;  %v271_v41 = vld.sshfl [vmem:[#allocation1] sm:$0xff pattern:$0x75316420] }
 0x1da   :  { %v274_v38 = vld.sshfl [vmem:[#allocation1 + $0x18] sm:$0xff pattern:$0x75316420]  ;;  %v273_v39 = vld.sshfl [vmem:[#allocation1 + $0x10] sm:$0xff pattern:$0x75316420]  ;;  %278 = vrot.lane.b32.xlu0 %v272_v37, %s1873_s28 }
 0x1db   :  { %282 = vrot.lane.b32.xlu2 %v274_v38, %s1873_s28  ;;  %280 = vrot.lane.b32.xlu1 %v273_v39, %s1873_s28  ;;  %v275_v40 = vld.sshfl [vmem:[#allocation1 + $0x20] sm:$0xff pattern:$0x75316420] }
 0x1e2   :  { %284 = vrot.lane.b32.xlu0 %v275_v40, %s1873_s28  ;;  %v1886_v40 = vmov 20  }
 0x1e3   :  { %260 = vperm.xlu1 %1691, %v1941_v4   ;;  %276 = vrot.lane.b32.xlu2 %v271_v41, %s1873_s28 }
 0x1e4   :  { %1694 = vset.pattern.permute.xlu2 %v1886_v40 }
 0x1eb   :  { %1692 = vset.pattern.permute.xlu1 %v1882_v45 }
 0x235   :  { %v283_v42 = vpop.permute.xlu2 %282 }
 0x23d   :  { %v277_v50 = vpop.permute.xlu2 %276 }
 0x24c   :  { %v279_v43 = vpop.permute.xlu0 %278 }
 0x24d   :  { %v281_v44 = vpop.permute.xlu1 %280  ;;  %v287_v54 = vsel %vm2530_vm4, %v277_v50, %v279_v43 }
 0x24e   :  { %v288_v47 = vsel %vm2530_vm4, %v279_v43, %v281_v44  ;;  %v289_v53 = vsel %vm2530_vm4, %v281_v44, %v283_v42 }
 0x254   :  { %v285_v46 = vpop.permute.xlu0 %284 }
 0x255   :  { %v261_v48 = vpop.permute.xlu1 %260  ;;  %v290_v49 = vsel %vm2530_vm4, %v283_v42, %v285_v46 }
 0x256   :  { %v296_v51 = vmul.f32 %v288_v47, %v261_v48  ;;  %v298_v52 = vmul.f32 %v290_v49, %v261_v48  ;;  %v295_v55 = vmul.f32 %v287_v54, %v261_v48  ;;  %v297_v56 = vmul.f32 %v289_v53, %v261_v48 }
 0x258   :  { %v303_v57 = vrot.slane %v296_v51, 4  ;;  %v304_v58 = vrot.slane %v298_v52, 4 }
 0x25a   :  { %v305_v59 = vsel %vm127_vm1, %v295_v55, %v303_v57  ;;  %v306_v60 = vsel %vm127_vm1, %v297_v56, %v304_v58  ;;  %v1887_v57 = vmov 21  }
 0x25b   :  { %v309_v61 = vadd.f32 %v305_v59, %v250_v32  ;;  %v310_v62 = vadd.f32 %v306_v60, %v251_v33  ;;  %1695 = vset.pattern.permute.xlu0 %v1887_v57 }
 0x25d   :  { %311 = vst [vmem:[#allocation2 + $0x8] sm:$0xff] %v309_v61 }
 0x25e   :  { %312 = vst [vmem:[#allocation2 + $0x10] sm:$0xff] %v310_v62 }
 0x264   :  { %v315_v63 = vld [vmem:[#allocation2 + $0x4] sm:$0xff] }
 0x265   :  { %325 = vst [vmem:[#allocation1] ss:$2 sm:$0xff] %v315_v63  ;;  %v316_v1 = vld [vmem:[#allocation2 + $0xc] sm:$0xff]  ;;  %v317_v5 = vld [vmem:[#allocation2 + $0x14] sm:$0xf] }
 0x266   :  { %327 = vst [vmem:[#allocation1 + $0x10] ss:$2 sm:$0xff] %v316_v1 }
 0x267   :  { %329 = vst [vmem:[#allocation1 + $0x20] ss:$2 sm:$0xff] %v317_v5 }
 0x26c   :  { %v331_v6 = vld.sshfl [vmem:[#allocation1 + $0x8] sm:$0xff pattern:$0x75316420]  ;;  %v330_v10 = vld.sshfl [vmem:[#allocation1] sm:$0xff pattern:$0x75316420] }
 0x26d   :  { %337 = vrot.lane.b32.xlu0 %v331_v6, %s1883_s30  ;;  %v333_v7 = vld.sshfl [vmem:[#allocation1 + $0x18] sm:$0xff pattern:$0x75316420]  ;;  %v332_v8 = vld.sshfl [vmem:[#allocation1 + $0x10] sm:$0xff pattern:$0x75316420] }
 0x26e   :  { %341 = vrot.lane.b32.xlu2 %v333_v7, %s1883_s30  ;;  %339 = vrot.lane.b32.xlu1 %v332_v8, %s1883_s30  ;;  %v334_v9 = vld.sshfl [vmem:[#allocation1 + $0x20] sm:$0xff pattern:$0x75316420] }
 0x275   :  { %343 = vrot.lane.b32.xlu0 %v334_v9, %s1883_s30 }
 0x276   :  { %319 = vperm.xlu1 %1692, %v1941_v4   ;;  %335 = vrot.lane.b32.xlu2 %v330_v10, %s1883_s30 }
 0x27e   :  { %1693 = vset.pattern.permute.xlu1 %v1884_v14 }
 0x2c8   :  { %v342_v11 = vpop.permute.xlu2 %341 }
 0x2d0   :  { %v336_v19 = vpop.permute.xlu2 %335 }
 0x2df   :  { %v338_v12 = vpop.permute.xlu0 %337 }
 0x2e0   :  { %v340_v13 = vpop.permute.xlu1 %339  ;;  %v346_v22 = vsel %vm2529_vm5, %v336_v19, %v338_v12 }
 0x2e1   :  { %v347_v16 = vsel %vm2529_vm5, %v338_v12, %v340_v13  ;;  %v348_v23 = vsel %vm2529_vm5, %v340_v13, %v342_v11 }
 0x2e7   :  { %v344_v15 = vpop.permute.xlu0 %343 }
 0x2e8   :  { %v349_v17 = vsel %vm2529_vm5, %v342_v11, %v344_v15  ;;  %v320_v18 = vpop.permute.xlu1 %319 }
 0x2e9   :  { %v355_v20 = vmul.f32 %v347_v16, %v320_v18  ;;  %v357_v21 = vmul.f32 %v349_v17, %v320_v18  ;;  %v354_v24 = vmul.f32 %v346_v22, %v320_v18  ;;  %v356_v25 = vmul.f32 %v348_v23, %v320_v18 }
 0x2eb   :  { %v362_v26 = vrot.slane %v355_v20, 4  ;;  %v363_v27 = vrot.slane %v357_v21, 4 }
 0x2ed   :  { %v364_v28 = vsel %vm127_vm1, %v354_v24, %v362_v26  ;;  %v365_v29 = vsel %vm127_vm1, %v356_v25, %v363_v27 }
 0x2ee   :  { %v368_v30 = vadd.f32 %v364_v28, %v309_v61  ;;  %v369_v31 = vadd.f32 %v365_v29, %v310_v62  ;;  %v1888_v62 = vmov 22  }
 0x2f0   :  { %370 = vst [vmem:[#allocation2 + $0x8] sm:$0xff] %v368_v30 }
 0x2f1   :  { %371 = vst [vmem:[#allocation2 + $0x10] sm:$0xff] %v369_v31 }
 0x2f7   :  { %v374_v32 = vld [vmem:[#allocation2 + $0x4] sm:$0xff] }
 0x2f8   :  { %v375_v33 = vld [vmem:[#allocation2 + $0xc] sm:$0xff]  ;;  %384 = vst [vmem:[#allocation1] ss:$2 sm:$0xff] %v374_v32  ;;  %v376_v34 = vld [vmem:[#allocation2 + $0x14] sm:$0xf] }
 0x2f9   :  { %386 = vst [vmem:[#allocation1 + $0x10] ss:$2 sm:$0xff] %v375_v33 }
 0x2fa   :  { %388 = vst [vmem:[#allocation1 + $0x20] ss:$2 sm:$0xff] %v376_v34 }
 0x2ff   :  { %v390_v35 = vld.sshfl [vmem:[#allocation1 + $0x8] sm:$0xff pattern:$0x75316420]  ;;  %v389_v39 = vld.sshfl [vmem:[#allocation1] sm:$0xff pattern:$0x75316420] }
 0x300   :  { %v392_v36 = vld.sshfl [vmem:[#allocation1 + $0x18] sm:$0xff pattern:$0x75316420]  ;;  %v391_v37 = vld.sshfl [vmem:[#allocation1 + $0x10] sm:$0xff pattern:$0x75316420]  ;;  %396 = vrot.lane.b32.xlu0 %v390_v35, %s1885_s4 }
 0x301   :  { %400 = vrot.lane.b32.xlu2 %v392_v36, %s1885_s4  ;;  %398 = vrot.lane.b32.xlu1 %v391_v37, %s1885_s4  ;;  %v393_v38 = vld.sshfl [vmem:[#allocation1 + $0x20] sm:$0xff pattern:$0x75316420] }
 0x308   :  { %402 = vrot.lane.b32.xlu0 %v393_v38, %s1885_s4 }
 0x309   :  { %378 = vperm.xlu1 %1693, %v1941_v4   ;;  %394 = vrot.lane.b32.xlu2 %v389_v39, %s1885_s4 }
 0x311   :  { %437 = vperm.xlu2 %1694, %v1941_v4   ;;  %1696 = vset.pattern.permute.xlu1 %v1888_v62 }
 0x35b   :  { %v401_v41 = vpop.permute.xlu2 %400 }
 0x363   :  { %v395_v48 = vpop.permute.xlu2 %394 }
 0x36b   :  { %v438_v11 = vpop.permute.xlu2 %437 }
 0x372   :  { %v397_v42 = vpop.permute.xlu0 %396 }
 0x373   :  { %v399_v43 = vpop.permute.xlu1 %398  ;;  %v405_v52 = vsel %vm2528_vm6, %v395_v48, %v397_v42 }
 0x374   :  { %v406_v45 = vsel %vm2528_vm6, %v397_v42, %v399_v43  ;;  %v407_v51 = vsel %vm2528_vm6, %v399_v43, %v401_v41 }
 0x37a   :  { %v403_v44 = vpop.permute.xlu0 %402 }
 0x37b   :  { %v379_v46 = vpop.permute.xlu1 %378  ;;  %v408_v47 = vsel %vm2528_vm6, %v401_v41, %v403_v44 }
 0x37c   :  { %v414_v49 = vmul.f32 %v406_v45, %v379_v46  ;;  %v416_v50 = vmul.f32 %v408_v47, %v379_v46  ;;  %v413_v53 = vmul.f32 %v405_v52, %v379_v46  ;;  %v415_v54 = vmul.f32 %v407_v51, %v379_v46 }
 0x37d   :  { %v1890_v47 = vmov 3  }
 0x37e   :  { %v421_v55 = vrot.slane %v414_v49, 4  ;;  %v422_v56 = vrot.slane %v416_v50, 4  ;;  %1697 = vset.pattern.permute.xlu2 %v1890_v47 }
 0x380   :  { %v423_v58 = vsel %vm127_vm1, %v413_v53, %v421_v55  ;;  %v424_v59 = vsel %vm127_vm1, %v415_v54, %v422_v56 }
 0x381   :  { %v427_v60 = vadd.f32 %v423_v58, %v368_v30  ;;  %v428_v61 = vadd.f32 %v424_v59, %v369_v31 }
 0x383   :  { %429 = vst [vmem:[#allocation2 + $0x8] sm:$0xff] %v427_v60 }
 0x384   :  { %430 = vst [vmem:[#allocation2 + $0x10] sm:$0xff] %v428_v61 }
 0x38a   :  { %v433_v63 = vld [vmem:[#allocation2 + $0x4] sm:$0xff] }
 0x38b   :  { %443 = vst [vmem:[#allocation1] ss:$2 sm:$0xff] %v433_v63  ;;  %v435_v1 = vld [vmem:[#allocation2 + $0x14] sm:$0xf]  ;;  %v434_v5 = vld [vmem:[#allocation2 + $0xc] sm:$0xff] }
 0x38c   :  { %447 = vst [vmem:[#allocation1 + $0x20] ss:$2 sm:$0xff] %v435_v1 }
 0x38d   :  { %445 = vst [vmem:[#allocation1 + $0x10] ss:$2 sm:$0xff] %v434_v5 }
 0x392   :  { %v449_v6 = vld.sshfl [vmem:[#allocation1 + $0x8] sm:$0xff pattern:$0x75316420]  ;;  %v448_v9 = vld.sshfl [vmem:[#allocation1] sm:$0xff pattern:$0x75316420] }
 0x393   :  { %455 = vrot.lane.b32.xlu0 %v449_v6, %s1889_s5  ;;  %v452_v7 = vld.sshfl [vmem:[#allocation1 + $0x20] sm:$0xff pattern:$0x75316420] }
 0x394   :  { %461 = vrot.lane.b32.xlu2 %v452_v7, %s1889_s5  ;;  %v450_v8 = vld.sshfl [vmem:[#allocation1 + $0x10] sm:$0xff pattern:$0x75316420]  ;;  %v451_v10 = vld.sshfl [vmem:[#allocation1 + $0x18] sm:$0xff pattern:$0x75316420] }
 0x395   :  { %457 = vrot.lane.b32.xlu1 %v450_v8, %s1889_s5  ;;  %v1891_v8 = vmov 1  }
 0x39b   :  { %453 = vrot.lane.b32.xlu0 %v448_v9, %s1889_s5  ;;  %v1892_v9 = vmov 10  }
 0x39d   :  { %459 = vrot.lane.b32.xlu1 %v451_v10, %s1889_s5  ;;  %v1893_v10 = vmov 0  }
 0x3a3   :  { %495 = vperm.xlu0 %1695, %v1941_v4  }
 0x3a5   :  { %534 = vperm.xlu1 %1696, %v1941_v4  }
 0x3ad   :  { %1698 = vset.pattern.permute.xlu1 %v1891_v8 }
 0x3ee   :  { %v462_v18 = vpop.permute.xlu2 %461 }
 0x405   :  { %v456_v12 = vpop.permute.xlu0 %455 }
 0x407   :  { %v458_v13 = vpop.permute.xlu1 %457 }
 0x408   :  { %v465_v14 = vsel %vm2527_vm7, %v456_v12, %v458_v13 }
 0x409   :  { %v473_v15 = vmul.f32 %v465_v14, %v438_v11 }
 0x40b   :  { %v480_v19 = vrot.slane %v473_v15, 4 }
 0x40d   :  { %v454_v16 = vpop.permute.xlu0 %453 }
 0x40e   :  { %v464_v17 = vsel %vm2527_vm7, %v454_v16, %v456_v12  ;;  %v1894_v12 = vmov 6  }
 0x40f   :  { %v472_v20 = vmul.f32 %v464_v17, %v438_v11  ;;  %v460_v21 = vpop.permute.xlu1 %459 }
 0x410   :  { %v466_v22 = vsel %vm2527_vm7, %v458_v13, %v460_v21  ;;  %v467_v23 = vsel %vm2527_vm7, %v460_v21, %v462_v18 }
 0x411   :  { %v482_v24 = vsel %vm127_vm1, %v472_v20, %v480_v19  ;;  %v475_v25 = vmul.f32 %v467_v23, %v438_v11  ;;  %v474_v27 = vmul.f32 %v466_v22, %v438_v11  ;;  %v2054_v11 = vsel %vm66_vm8, 1, %v1893_v10 }
 0x412   :  { %v486_v26 = vadd.f32 %v482_v24, %v427_v60 }
 0x413   :  { %v481_v28 = vrot.slane %v475_v25, 4 }
 0x414   :  { %488 = vst [vmem:[#allocation2 + $0x8] sm:$0xff] %v486_v26 }
 0x415   :  { %v483_v29 = vsel %vm127_vm1, %v474_v27, %v481_v28  ;;  %v496_v33 = vpop.permute.xlu0 %495  ;;  %v1897_v27 = vmov 7   ;;  %v1898_v28 = vmov 2  }
 0x416   :  { %v487_v30 = vadd.f32 %v483_v29, %v428_v61  ;;  %1699 = vset.pattern.permute.xlu0 %v1898_v28 }
 0x417   :  { %v535_v43 = vpop.permute.xlu1 %534 }
 0x418   :  { %489 = vst [vmem:[#allocation2 + $0x10] sm:$0xff] %v487_v30 }
 0x41b   :  { %v492_v31 = vld [vmem:[#allocation2 + $0x4] sm:$0xff] }
 0x41c   :  { %500 = vst [vmem:[#allocation1] ss:$2 sm:$0xff] %v492_v31 }
 0x41f   :  { %v493_v32 = vld [vmem:[#allocation2 + $0xc] sm:$0xff] }
 0x420   :  { %502 = vst [vmem:[#allocation1 + $0x10] ss:$2 sm:$0xff] %v493_v32 }
 0x423   :  { %v503_v34 = vld.sshfl [vmem:[#allocation1] sm:$0xff pattern:$0x75316420]  ;;  %v504_v35 = vld.sshfl [vmem:[#allocation1 + $0x8] sm:$0xff pattern:$0x75316420] }
 0x424   :  { %v512_v36 = vmul.f32 %v504_v35, %v496_v33  ;;  %539 = vst [vmem:[#allocation1] ss:$2 sm:$0xff] %v1874_v0  ;;  %v511_v37 = vmul.f32 %v503_v34, %v496_v33 }
 0x426   :  { %v519_v38 = vrot.slane %v512_v36, 4  ;;  %v1899_v36 = vmov 8  }
 0x427   :  { %v506_v39 = vld.sshfl [vmem:[#allocation1 + $0x18] sm:$0xff pattern:$0x75316420]  ;;  %v505_v42 = vld.sshfl [vmem:[#allocation1 + $0x10] sm:$0xff pattern:$0x75316420] }
 0x428   :  { %v521_v40 = vsel %vm127_vm1, %v511_v37, %v519_v38  ;;  %v514_v44 = vmul.f32 %v506_v39, %v496_v33  ;;  %v513_v52 = vmul.f32 %v505_v42, %v496_v33  ;;  %v2069_v33 = vld [vmem:[#allocation9 + $0x8] sm:$0xff]  ;;  %v1900_v39 = vmov 12  }
 0x429   :  { %v525_v41 = vadd.f32 %v521_v40, %v486_v26  ;;  %v1896_v26 = vmov 11   ;;  %vm67_vm10 = vcmp.gt.f32.partialorder %v2069_v33, 0.5 }
 0x42a   :  { %v520_v50 = vrot.slane %v514_v44, 4 }
 0x42b   :  { %541 = vst [vmem:[#allocation1 + $0x10] ss:$2 sm:$0xff] %v525_v41  ;;  %v542_v45 = vld.sshfl [vmem:[#allocation1] sm:$0xff pattern:$0x75316420] }
 0x42c   :  { %v543_v46 = vld.sshfl [vmem:[#allocation1 + $0x8] sm:$0xff pattern:$0x75316420]  ;;  %v550_v48 = vmul.f32 %v542_v45, %v535_v43  ;;  %v522_v57 = vsel %vm127_vm1, %v513_v52, %v520_v50  ;;  %v1902_v45 = vmov 13  }
 0x42d   :  { %v551_v49 = vmul.f32 %v543_v46, %v535_v43  ;;  %v526_v61 = vadd.f32 %v522_v57, %v487_v30 }
 0x42f   :  { %v558_v51 = vrot.slane %v551_v49, 4 }
 0x431   :  { %v560_v53 = vsel %vm127_vm1, %v550_v48, %v558_v51 }
 0x432   :  { %v544_v54 = vld.sshfl [vmem:[#allocation1 + $0x10] sm:$0xff pattern:$0x75316420]  ;;  %v545_v55 = vld.sshfl [vmem:[#allocation1 + $0x18] sm:$0xff pattern:$0x75316420]  ;;  %v2036_v56 = vadd.f32 %v560_v53, %v525_v41 }
 0x433   :  { %v553_v58 = vmul.f32 %v545_v55, %v535_v43  ;;  %v552_v59 = vmul.f32 %v544_v54, %v535_v43  ;;  %v1901_v43 = vmov 9  }
 0x434   :  { %566 = vst [vmem:[#allocation2 + $0x8] sm:$0xff] %v2036_v56 }
 0x435   :  { %v559_v60 = vrot.slane %v553_v58, 4  ;;  %576 = vst [vmem:[#allocation1] ss:$2 sm:$0xff] %v2036_v56 }
 0x437   :  { %v561_v62 = vsel %vm127_vm1, %v552_v59, %v559_v60 }
 0x438   :  { %v2042_v63 = vadd.f32 %v561_v62, %v526_v61 }
 0x43a   :  { %567 = vst [vmem:[#allocation2 + $0x10] sm:$0xff] %v2042_v63 }
 0x43b   :  { %578 = vst [vmem:[#allocation1 + $0x10] ss:$2 sm:$0xff] %v2042_v63 }
 0x43c   :  { %v580_v1 = vld.sshfl [vmem:[#allocation1 + $0x8] sm:$0xff pattern:$0x75316420]  ;;  %v579_v5 = vld.sshfl [vmem:[#allocation1] sm:$0xff pattern:$0x75316420] }
 0x43d   :  { %585 = vrot.lane.b32.xlu2 %v580_v1, %s1873_s28  ;;  %583 = vrot.lane.b32.xlu0 %v579_v5, %s1873_s28 }
 0x442   :  { %v581_v6 = vld.sshfl [vmem:[#allocation1 + $0x10] sm:$0xff pattern:$0x75316420]  ;;  %v582_v7 = vld.sshfl [vmem:[#allocation1 + $0x18] sm:$0xff pattern:$0x75316420] }
 0x443   :  { %587 = vrot.lane.b32.xlu1 %v581_v6, %s1873_s28 }
 0x445   :  { %571 = vperm.xlu2 %1697, %v1941_v4  }
 0x44b   :  { %589 = vrot.lane.b32.xlu1 %v582_v7, %s1873_s28 }
 0x44d   :  { %1701 = vset.pattern.permute.xlu2 %v1892_v9 }
 0x453   :  { %620 = vperm.xlu1 %1698, %v1941_v4  }
 0x45b   :  { %1700 = vset.pattern.permute.xlu1 %v1894_v12 }
 0x45c   :  { %704 = vperm.xlu1 %1700, %v2054_v11  }
 0x464   :  { %1702 = vset.pattern.permute.xlu1 %v1897_v27 }
 0x465   :  { %735 = vperm.xlu1 %1702, %v2054_v11  }
 0x46d   :  { %1705 = vset.pattern.permute.xlu1 %v1892_v9 }
 0x497   :  { %v586_v13 = vpop.permute.xlu2 %585 }
 0x49f   :  { %v572_v17 = vpop.permute.xlu2 %571 }
 0x4af   :  { %v584_v14 = vpop.permute.xlu0 %583 }
 0x4b0   :  { %v591_v16 = vsel %vm2530_vm4, %v584_v14, %v586_v13 }
 0x4b1   :  { %v597_v20 = vmul.f32 %v591_v16, %v572_v17 }
 0x4b5   :  { %v588_v15 = vpop.permute.xlu1 %587 }
 0x4b6   :  { %v592_v18 = vsel %vm2530_vm4, %v586_v13, %v588_v15 }
 0x4b7   :  { %v598_v19 = vmul.f32 %v592_v18, %v572_v17 }
 0x4b9   :  { %v603_v21 = vrot.slane %v598_v19, 4 }
 0x4bb   :  { %v604_v22 = vsel %vm127_vm1, %v597_v20, %v603_v21 }
 0x4bc   :  { %605 = vrot.lane.b32.xlu2 %v604_v22, %s1895_s6 }
 0x4bd   :  { %v590_v23 = vpop.permute.xlu1 %589 }
 0x4be   :  { %v593_v24 = vsel %vm2530_vm4, %v588_v15, %v590_v23 }
 0x4bf   :  { %v599_v25 = vmul.f32 %v593_v24, %v572_v17 }
 0x4c1   :  { %607 = vrot.lane.b32.xlu0 %v599_v25, %s1895_s6 }
 0x4c4   :  { %721 = vperm.xlu2 %1701, %v2054_v11  }
 0x4c5   :  { %v621_v46 = vpop.permute.xlu1 %620 }
 0x4c9   :  { %650 = vperm.xlu0 %1699, %v1941_v4   ;;  %v702_v4 = vsel %vm67_vm10, 1, %v1893_v10 }
 0x4cc   :  { %1703 = vset.pattern.permute.xlu2 %v1896_v26 }
 0x4cd   :  { %752 = vperm.xlu2 %1703, %v2054_v11  }
 0x4ce   :  { %v2091_v49 = vpop.permute.xlu1 %704 }
 0x4cf   :  { %vm709_vm15 = vcmp.eq.s32.totalorder %v2091_v49, 1 }
 0x4d1   :  { %1704 = vset.pattern.permute.xlu0 %v1894_v12 }
 0x4d5   :  { %1706 = vset.pattern.permute.xlu2 %v1899_v36 }
 0x4d7   :  { %v2095_v51 = vpop.permute.xlu1 %735 }
 0x516   :  { %v606_v29 = vpop.permute.xlu2 %605 }
 0x517   :  { %v609_v30 = vrot.slane %v606_v29, 4 }
 0x519   :  { %v612_v31 = vsel %vm2526_vm9, %v609_v30, %v606_v29 }
 0x51a   :  { %v617_v32 = vsub.f32 %v2036_v56, %v612_v31 }
 0x51c   :  { %625 = vst [vmem:[#allocation1] ss:$2 sm:$0xff] %v617_v32 }
 0x51e   :  { %v2089_v48 = vpop.permute.xlu2 %721 }
 0x51f   :  { %vm726_vm14 = vcmp.eq.s32.totalorder %v2089_v48, 1 }
 0x523   :  { %v629_v34 = vld.sshfl [vmem:[#allocation1 + $0x8] sm:$0xff pattern:$0x75316420]  ;;  %v628_v35 = vld.sshfl [vmem:[#allocation1] sm:$0xff pattern:$0x75316420] }
 0x524   :  { %634 = vrot.lane.b32.xlu2 %v629_v34, %s1876_s0  ;;  %632 = vrot.lane.b32.xlu1 %v628_v35, %s1876_s0  ;;  %687 = vst [vmem:[#allocation1] ss:$2 sm:$0xff] %v1937_v2 }
 0x527   :  { %v2093_v50 = vpop.permute.xlu2 %752 }
 0x528   :  { %vm757_vm8 = vcmp.eq.s32.totalorder %v2093_v50, 1 }
 0x52b   :  { %v688_v47 = vld.sshfl [vmem:[#allocation1 + $0x8] sm:$0xff pattern:$0x75316420] }
 0x52c   :  { %724 = vperm.xlu1 %1705, %v702_v4   ;;  %691 = vst [vmem:[#allocation1] ss:$2 sm:$0xff] %v1939_v3 }
 0x533   :  { %v608_v37 = vpop.permute.xlu0 %607 }
 0x534   :  { %v610_v38 = vrot.slane %v608_v37, 4  ;;  %1707 = vset.pattern.permute.xlu1 %v1900_v39 }
 0x535   :  { %783 = vperm.xlu1 %1707, %v2054_v11  }
 0x536   :  { %v613_v40 = vsel %vm127_vm1, %v609_v30, %v610_v38  ;;  %vm740_vm1 = vcmp.eq.s32.totalorder %v2095_v51, 1 }
 0x537   :  { %v614_v41 = vsel %vm2526_vm9, %v613_v40, %v608_v37 }
 0x538   :  { %v618_v42 = vsub.f32 %v2042_v63, %v614_v41 }
 0x53a   :  { %627 = vst [vmem:[#allocation1 + $0x10] ss:$2 sm:$0xff] %v618_v42 }
 0x53b   :  { %v651_v55 = vpop.permute.xlu0 %650 }
 0x53d   :  { %1710 = vset.pattern.permute.xlu1 %v1901_v43 }
 0x53e   :  { %797 = vperm.xlu1 %1710, %v2054_v11  }
 0x541   :  { %v630_v2 = vld.sshfl [vmem:[#allocation1 + $0x10] sm:$0xff pattern:$0x75316420]  ;;  %v631_v44 = vld.sshfl [vmem:[#allocation1 + $0x18] sm:$0xff pattern:$0x75316420] }
 0x542   :  { %636 = vrot.lane.b32.xlu0 %v630_v2, %s1876_s0  ;;  %638 = vrot.lane.b32.xlu2 %v631_v44, %s1876_s0 }
 0x546   :  { %1712 = vset.pattern.permute.xlu1 %v1899_v36 }
 0x547   :  { %769 = vperm.xlu1 %1712, %v702_v4  }
 0x54a   :  { %707 = vperm.xlu0 %1704, %v702_v4   ;;  %766 = vperm.xlu2 %1706, %v2054_v11  }
 0x54f   :  { %1715 = vset.pattern.permute.xlu1 %v1902_v45 }
 0x550   :  { %817 = vperm.xlu1 %1715, %v702_v4  }
 0x552   :  { %1709 = vset.pattern.permute.xlu0 %v1896_v26  ;;  %1708 = vset.pattern.permute.xlu2 %v1897_v27 }
 0x553   :  { %755 = vperm.xlu0 %1709, %v702_v4   ;;  %738 = vperm.xlu2 %1708, %v702_v4  }
 0x558   :  { %1751 = vset.pattern.permute.xlu1 %v1893_v10 }
 0x55b   :  { %1714 = vset.pattern.permute.xlu0 %v1901_v43  ;;  %1711 = vset.pattern.permute.xlu2 %v1902_v45  ;;  %v692_v45 = vld.sshfl [vmem:[#allocation1] sm:$0xff pattern:$0x75316420] }
 0x55c   :  { %800 = vperm.xlu0 %1714, %v702_v4   ;;  %814 = vperm.xlu2 %1711, %v2054_v11  }
 0x564   :  { %1713 = vset.pattern.permute.xlu2 %v1900_v39  ;;  %1753 = vset.pattern.permute.xlu0 %v1893_v10 }
 0x565   :  { %786 = vperm.xlu2 %1713, %v702_v4  }
 0x56d   :  { %1752 = vset.pattern.permute.xlu2 %v1893_v10 }
 0x56e   :  { %1717 = vrot.lane.b32.xlu2 %v1874_v0, %s1876_s0 }
 0x57e   :  { %v635_v52 = vpop.permute.xlu2 %634 }
 0x596   :  { %v633_v53 = vpop.permute.xlu1 %632 }
 0x597   :  { %v640_v54 = vsel %vm2533_vm0, %v633_v53, %v635_v52 }
 0x598   :  { %v646_v56 = vmul.f32 %v640_v54, %v621_v46 }
 0x59a   :  { %v653_v57 = vadd.f32 %v651_v55, %v646_v56 }
 0x59c   :  { %1754 = vrsqrt.f32 %v653_v57  ;;  %v639_v58 = vpop.permute.xlu2 %638  ;;  %vm662_vm12 = vweird.f32 %v653_v57 }
 0x59e   :  { %v2098_v59 = vpop.permute.xlu1 %724 }
 0x5a2   :  { %v1755_v3 = vpop.eup %1754 }
 0x5a3   :  { %v657_v60 = vmul.f32 %v1755_v3, %v653_v57  ;;  %vm663_vm11 = vweird.f32 %v1755_v3 }
 0x5a4   :  { %v2100_v61 = vpop.permute.xlu2 %766  ;;  %vm664_vm13 = vmor %vm662_vm12, %vm663_vm11 }
 0x5a5   :  { %v658_v62 = vmul.f32 %v1755_v3, %v657_v60  ;;  %vm2541_vm10 = vcmp.eq.s32.totalorder %v2100_v61, 1 }
 0x5a7   :  { %v659_v63 = vmul.f32 0.5, %v658_v62  ;;  %v2102_v1 = vpop.permute.xlu1 %783 }
 0x5a8   :  { %vm788_vm12 = vcmp.eq.s32.totalorder %v2102_v1, 1 }
 0x5a9   :  { %v660_v5 = vsub.f32 1.5, %v659_v63 }
 0x5ab   :  { %v661_v6 = vmul.f32 %v1755_v3, %v660_v5 }
 0x5ad   :  { %v665_v7 = vsel %vm664_vm13, %v1755_v3, %v661_v6  ;;  %v2104_v8 = vpop.permute.xlu2 %738 }
 0x5ae   :  { %v696_v9 = vmul.f32 %v688_v47, %v665_v7  ;;  %v693_v47 = vld.sshfl [vmem:[#allocation1 + $0x8] sm:$0xff pattern:$0x75316420] }
 0x5b0   :  { %v2106_v10 = vperm.slane %v696_v9, 0  ;;  %v2108_v11 = vperm.slane %v696_v9, 1  ;;  %v2119_v14 = vpop.permute.xlu1 %797  ;;  %v2125_v16 = vperm.slane %v696_v9, 2  ;;  %v2140_v22 = vperm.slane %v696_v9, 3 }
 0x5b1   :  { %vm2534_vm11 = vcmp.eq.s32.totalorder %v2119_v14, 1 }
 0x5b2   :  { %v714_v12 = vsel %vm709_vm15, %v2106_v10, 0.0  ;;  %v728_v13 = vsel %vm726_vm14, %v2106_v10, 0.0 }
 0x5b3   :  { %v745_v15 = vsel %vm740_vm1, %v2108_v11, %v714_v12  ;;  %v759_v17 = vsel %vm757_vm8, %v2108_v11, %v728_v13 }
 0x5b4   :  { %v637_v18 = vpop.permute.xlu0 %636  ;;  %v776_v19 = vsel %vm2541_vm10, %v2125_v16, %v745_v15  ;;  %v790_v26 = vsel %vm788_vm12, %v2125_v16, %v759_v17 }
 0x5b5   :  { %v641_v20 = vsel %vm2533_vm0, %v635_v52, %v637_v18  ;;  %v642_v21 = vsel %vm2533_vm0, %v637_v18, %v639_v58  ;;  %v807_v27 = vsel %vm2534_vm11, %v2140_v22, %v776_v19  ;;  %vm2538_vm11 = vcmp.eq.s32.totalorder %v2098_v59, 1 }
 0x5b6   :  { %v647_v23 = vmul.f32 %v641_v20, %v621_v46  ;;  %v648_v24 = vmul.f32 %v642_v21, %v621_v46  ;;  %v2142_v25 = vpop.permute.xlu2 %814  ;;  %v731_v63 = vsel %vm2538_vm11, %v2106_v10, 0.0 }
 0x5b7   :  { %vm2540_vm13 = vcmp.eq.s32.totalorder %v2142_v25, 1 }
 0x5b8   :  { %v654_v28 = vadd.f32 %v651_v55, %v647_v23  ;;  %v655_v29 = vadd.f32 %v651_v55, %v648_v24  ;;  %v821_v30 = vsel %vm2540_vm13, %v2140_v22, %v790_v26 }
 0x5b9   :  { %v2154_v31 = vmul.f32 %v821_v30, %v807_v27  ;;  %v2160_v39 = vpop.permute.xlu1 %769 }
 0x5ba   :  { %1756 = vrsqrt.f32 %v654_v28  ;;  %vm672_vm6 = vweird.f32 %v654_v28  ;;  %vm682_vm4 = vweird.f32 %v655_v29 }
 0x5bb   :  { %1758 = vrsqrt.f32 %v655_v29  ;;  %v852_v32 = vmul.f32 0.9614214, %v2154_v31 }
 0x5bc   :  { %v2157_v34 = vpop.permute.xlu0 %707 }
 0x5bd   :  { %869 = vrot.lane.b32.xlu1 %v852_v32, %s1876_s0  ;;  %vm710_vm3 = vcmp.eq.s32.totalorder %v2157_v34, 1 }
 0x5be   :  { %v717_v3 = vsel %vm710_vm3, %v2106_v10, 0.0 }
 0x5bf   :  { %v2166_v56 = vpop.permute.xlu2 %786 }
 0x5c0   :  { %v1757_v35 = vpop.eup %1756 }
 0x5c1   :  { %v1759_v36 = vpop.eup %1758  ;;  %v667_v4 = vmul.f32 %v1757_v35, %v654_v28  ;;  %vm673_vm9 = vweird.f32 %v1757_v35 }
 0x5c2   :  { %v677_v37 = vmul.f32 %v1759_v36, %v655_v29  ;;  %vm683_vm7 = vweird.f32 %v1759_v36  ;;  %vm674_vm5 = vmor %vm672_vm6, %vm673_vm9  ;;  %v2174_v60 = vpop.permute.xlu1 %817  ;;  %vm2543_vm9 = vcmp.eq.s32.totalorder %v2119_v14, 1 }
 0x5c3   :  { %v668_v38 = vmul.f32 %v1757_v35, %v667_v4  ;;  %vm684_vm2 = vmor %vm682_vm4, %vm683_vm7  ;;  %vm2537_vm4 = vcmp.eq.s32.totalorder %v2166_v56, 1  ;;  %vm2536_vm6 = vcmp.eq.s32.totalorder %v2174_v60, 1 }
 0x5c4   :  { %v678_v40 = vmul.f32 %v1759_v36, %v677_v37 }
 0x5c5   :  { %v669_v41 = vmul.f32 0.5, %v668_v38  ;;  %v2162_v42 = vpop.permute.xlu0 %755 }
 0x5c6   :  { %v679_v43 = vmul.f32 0.5, %v678_v40  ;;  %vm2535_vm0 = vcmp.eq.s32.totalorder %v2162_v42, 1 }
 0x5c7   :  { %v670_v2 = vsub.f32 1.5, %v669_v41  ;;  %v762_v13 = vsel %vm2535_vm0, %v2108_v11, %v731_v63 }
 0x5c8   :  { %v680_v44 = vsub.f32 1.5, %v679_v43  ;;  %v793_v23 = vsel %vm2537_vm4, %v2125_v16, %v762_v13 }
 0x5c9   :  { %v671_v46 = vmul.f32 %v1757_v35, %v670_v2 }
 0x5ca   :  { %v681_v52 = vmul.f32 %v1759_v36, %v680_v44 }
 0x5cb   :  { %v675_v53 = vsel %vm674_vm5, %v1757_v35, %v671_v46  ;;  %vm2542_vm5 = vcmp.eq.s32.totalorder %v2160_v39, 1 }
 0x5cc   :  { %v685_v54 = vsel %vm684_vm2, %v1759_v36, %v681_v52  ;;  %v697_v55 = vmul.f32 %v692_v45, %v675_v53  ;;  %v2168_v57 = vmul.f32 %v675_v53, %v654_v28  ;;  %vm741_vm2 = vcmp.eq.s32.totalorder %v2104_v8, 1 }
 0x5cd   :  { %v698_v58 = vmul.f32 %v693_v47, %v685_v54  ;;  %v2176_v62 = vmul.f32 %v685_v54, %v655_v29  ;;  %v748_v10 = vsel %vm741_vm2, %v2108_v11, %v717_v3 }
 0x5ce   :  { %v712_v5 = vperm.slane %v697_v55, 0  ;;  %v743_v6 = vperm.slane %v697_v55, 1  ;;  %v2182_v7 = vpop.permute.xlu0 %800  ;;  %v774_v19 = vperm.slane %v697_v55, 2  ;;  %v779_v27 = vsel %vm2542_vm5, %v2125_v16, %v748_v10 }
 0x5cf   :  { %v713_v9 = vperm.slane %v698_v58, 0  ;;  %v744_v12 = vperm.slane %v698_v58, 1  ;;  %vm2539_vm7 = vcmp.eq.s32.totalorder %v2182_v7, 1  ;;  %v775_v21 = vperm.slane %v698_v58, 2 }
 0x5d0   :  { %v729_v15 = vsel %vm726_vm14, %v712_v5, 0.0  ;;  %v718_v11 = vsel %vm710_vm3, %v712_v5, 0.0  ;;  %v805_v28 = vperm.slane %v697_v55, 3  ;;  %v810_v32 = vsel %vm2539_vm7, %v2140_v22, %v779_v27 }
 0x5d1   :  { %v730_v17 = vsel %vm726_vm14, %v713_v9, 0.0  ;;  %v760_v18 = vsel %vm757_vm8, %v743_v6, %v729_v15  ;;  %v719_v26 = vsel %vm710_vm3, %v713_v9, 0.0  ;;  %v733_v30 = vsel %vm2538_vm11, %v713_v9, 0.0 }
 0x5d2   :  { %v761_v20 = vsel %vm757_vm8, %v744_v12, %v730_v17  ;;  %v791_v24 = vsel %vm788_vm12, %v774_v19, %v760_v18  ;;  %v806_v35 = vperm.slane %v698_v58, 3  ;;  %v749_v36 = vsel %vm741_vm2, %v743_v6, %v718_v11 }
 0x5d3   :  { %v792_v29 = vsel %vm788_vm12, %v775_v21, %v761_v20  ;;  %v732_v4 = vsel %vm2538_vm11, %v712_v5, 0.0  ;;  %v824_v16 = vsel %vm2536_vm6, %v2140_v22, %v793_v23  ;;  %v822_v37 = vsel %vm2540_vm13, %v805_v28, %v791_v24  ;;  %v1718_v23 = vpop.permute.xlu2 %1717 }
 0x5d4   :  { %v750_v38 = vsel %vm741_vm2, %v744_v12, %v719_v26  ;;  %v834_v40 = vmul.f32 %v824_v16, %v810_v32  ;;  %v716_v41 = vsel %vm709_vm15, %v713_v9, 0.0  ;;  %v823_v43 = vsel %vm2540_vm13, %v806_v35, %v792_v29 }
 0x5d5   :  { %v764_v2 = vsel %vm2535_vm0, %v744_v12, %v733_v30  ;;  %v747_v44 = vsel %vm740_vm1, %v744_v12, %v716_v41  ;;  %v715_v22 = vsel %vm709_vm15, %v712_v5, 0.0  ;;  %v763_v45 = vsel %vm2535_vm0, %v743_v6, %v732_v4  ;;  %vm2544_vm0 = vmmov %vm2543_vm9 }
 0x5d6   :  { %v856_v46 = vmul.f32 0.9614214, %v834_v40  ;;  %v778_v47 = vsel %vm2541_vm10, %v775_v21, %v747_v44  ;;  %v746_v52 = vsel %vm740_vm1, %v743_v6, %v715_v22  ;;  %v781_v55 = vsel %vm2542_vm5, %v775_v21, %v750_v38 }
 0x5d7   :  { %v809_v53 = vsel %vm2543_vm9, %v806_v35, %v778_v47  ;;  %v777_v54 = vsel %vm2541_vm10, %v774_v19, %v746_v52  ;;  %v795_v58 = vsel %vm2537_vm4, %v775_v21, %v764_v2  ;;  %v780_v5 = vsel %vm2542_vm5, %v774_v19, %v749_v36 }
 0x5d8   :  { %877 = vrot.lane.b32.xlu1 %v856_v46, %s1876_s0  ;;  %v833_v3 = vmul.f32 %v823_v43, %v809_v53  ;;  %v808_v63 = vsel %vm2544_vm0, %v805_v28, %v777_v54  ;;  %v794_v6 = vsel %vm2537_vm4, %v774_v19, %v763_v45  ;;  %v826_v13 = vsel %vm2536_vm6, %v806_v35, %v795_v58 }
 0x5d9   :  { %v832_v9 = vmul.f32 %v822_v37, %v808_v63  ;;  %v812_v15 = vsel %vm2539_vm7, %v806_v35, %v781_v55  ;;  %v825_v17 = vsel %vm2536_vm6, %v805_v28, %v794_v6  ;;  %v811_v18 = vsel %vm2539_vm7, %v805_v28, %v780_v5 }
 0x5da   :  { %v854_v12 = vmul.f32 0.9614214, %v833_v3  ;;  %v836_v19 = vmul.f32 %v826_v13, %v812_v15  ;;  %v835_v20 = vmul.f32 %v825_v17, %v811_v18  ;;  %v1719_v24 = vunpack.i.l.bf16 %v1718_v23 }
 0x5db   :  { %v853_v10 = vmul.f32 0.9614214, %v832_v9  ;;  %vm2545_vm0 = vcmask 7168   ;;  %v1720_v4 = vunpack.i.h.bf16 %v1718_v23 }
 0x5dc   :  { %873 = vrot.lane.b32.xlu0 %v854_v12, %s1876_s0  ;;  %v858_v21 = vmul.f32 0.9614214, %v836_v19  ;;  %v857_v11 = vmul.f32 0.9614214, %v835_v20  ;;  %vm2546_vm9 = vmmov %vm2545_vm0 }
 0x5dd   :  { %871 = vrot.lane.b32.xlu2 %v853_v10, %s1876_s0  ;;  %vm2547_vm6 = vmmov %vm2545_vm0 }
 0x5de   :  { %vm2548_vm4 = vmmov %vm2545_vm0 }
 0x5e0   :  { %1722 = vrot.lane.b32.xlu1 %v1874_v0, %s1878_s2 }
 0x5e4   :  { %881 = vrot.lane.b32.xlu0 %v858_v21, %s1876_s0 }
 0x5e5   :  { %879 = vrot.lane.b32.xlu2 %v857_v11, %s1876_s0 }
 0x62f   :  { %v870_v26 = vpop.permute.xlu1 %869 }
 0x630   :  { %v883_v27 = vsel %vm2545_vm0, %v1719_v24, %v870_v26 }
 0x631   :  { %v895_v28 = vadd.f32 %v883_v27, %v2154_v31 }
 0x633   :  { %v916_v29 = vmul.f32 0.924331, %v895_v28 }
 0x635   :  { %933 = vrot.lane.b32.xlu2 %v916_v29, %s1878_s2 }
 0x637   :  { %v872_v30 = vpop.permute.xlu2 %871 }
 0x638   :  { %v884_v32 = vsel %vm2546_vm9, %v870_v26, %v872_v30  ;;  %vm2549_vm9 = vmmov %vm2545_vm0 }
 0x639   :  { %v896_v35 = vadd.f32 %v884_v32, %v832_v9 }
 0x63b   :  { %v917_v36 = vmul.f32 0.924331, %v896_v35 }
 0x63d   :  { %935 = vrot.lane.b32.xlu0 %v917_v36, %s1878_s2 }
 0x63f   :  { %v880_v16 = vpop.permute.xlu2 %879 }
 0x64a   :  { %v878_v37 = vpop.permute.xlu1 %877 }
 0x64b   :  { %v886_v38 = vsel %vm2547_vm6, %v1720_v4, %v878_v37  ;;  %v887_v41 = vsel %vm2548_vm4, %v878_v37, %v880_v16  ;;  %vm2550_vm4 = vcmask 15360  }
 0x64c   :  { %v898_v43 = vadd.f32 %v886_v38, %v834_v40  ;;  %v899_v2 = vadd.f32 %v887_v41, %v835_v20  ;;  %vm2551_vm6 = vmmov %vm2550_vm4 }
 0x64e   :  { %v874_v31 = vpop.permute.xlu0 %873  ;;  %v921_v44 = vmul.f32 0.924331, %v899_v2  ;;  %v920_v22 = vmul.f32 0.924331, %v898_v43 }
 0x64f   :  { %v885_v45 = vsel %vm2545_vm0, %v872_v30, %v874_v31  ;;  %vm2552_vm0 = vmmov %vm2550_vm4 }
 0x650   :  { %v897_v46 = vadd.f32 %v885_v45, %v833_v3  ;;  %943 = vrot.lane.b32.xlu0 %v921_v44, %s1878_s2  ;;  %941 = vrot.lane.b32.xlu2 %v920_v22, %s1878_s2 }
 0x652   :  { %v918_v47 = vmul.f32 0.924331, %v897_v46  ;;  %v1723_v55 = vpop.permute.xlu1 %1722 }
 0x653   :  { %v1724_v58 = vunpack.i.l.bf16 %v1723_v55  ;;  %v1725_v9 = vunpack.i.h.bf16 %v1723_v55 }
 0x654   :  { %937 = vrot.lane.b32.xlu1 %v918_v47, %s1878_s2 }
 0x656   :  { %v882_v52 = vpop.permute.xlu0 %881 }
 0x657   :  { %v888_v53 = vsel %vm2549_vm9, %v880_v16, %v882_v52  ;;  %vm2553_vm9 = vmmov %vm2552_vm0 }
 0x658   :  { %v900_v54 = vadd.f32 %v888_v53, %v836_v19  ;;  %1727 = vrot.lane.b32.xlu2 %v1874_v0, %s1880_s29 }
 0x65a   :  { %v922_v40 = vmul.f32 0.924331, %v900_v54 }
 0x65c   :  { %945 = vrot.lane.b32.xlu1 %v922_v40, %s1878_s2 }
 0x68f   :  { %v934_v3 = vpop.permute.xlu2 %933 }
 0x690   :  { %v947_v63 = vsel %vm2550_vm4, %v1724_v58, %v934_v3  ;;  %vm2554_vm4 = vmmov %vm2552_vm0 }
 0x691   :  { %v959_v5 = vadd.f32 %v947_v63, %v895_v28 }
 0x693   :  { %v980_v6 = vmul.f32 0.8543878, %v959_v5 }
 0x695   :  { %997 = vrot.lane.b32.xlu0 %v980_v6, %s1880_s29 }
 0x6aa   :  { %v942_v12 = vpop.permute.xlu2 %941 }
 0x6ab   :  { %v950_v13 = vsel %vm2551_vm6, %v1725_v9, %v942_v12  ;;  %vm2555_vm6 = vmmov %vm2552_vm0 }
 0x6ac   :  { %v962_v15 = vadd.f32 %v950_v13, %v898_v43 }
 0x6ae   :  { %v984_v10 = vmul.f32 0.8543878, %v962_v15 }
 0x6af   :  { %v936_v17 = vpop.permute.xlu0 %935 }
 0x6b0   :  { %v948_v18 = vsel %vm2552_vm0, %v934_v3, %v936_v17  ;;  %1005 = vrot.lane.b32.xlu0 %v984_v10, %s1880_s29  ;;  %vm2556_vm0 = vcmask 31744  }
 0x6b1   :  { %v960_v19 = vadd.f32 %v948_v18, %v896_v35 }
 0x6b2   :  { %v1728_v4 = vpop.permute.xlu2 %1727 }
 0x6b3   :  { %v981_v20 = vmul.f32 0.8543878, %v960_v19  ;;  %v1729_v16 = vunpack.i.l.bf16 %v1728_v4 }
 0x6b5   :  { %999 = vrot.lane.b32.xlu1 %v981_v20, %s1880_s29 }
 0x6b8   :  { %1732 = vrot.lane.b32.xlu0 %v1874_v0, %s1873_s28 }
 0x6c2   :  { %v944_v21 = vpop.permute.xlu0 %943 }
 0x6c3   :  { %v951_v11 = vsel %vm2553_vm9, %v942_v12, %v944_v21  ;;  %vm2557_vm9 = vmmov %vm2556_vm0 }
 0x6c4   :  { %v963_v23 = vadd.f32 %v951_v11, %v899_v2  ;;  %v1730_v2 = vunpack.i.h.bf16 %v1728_v4 }
 0x6c6   :  { %v938_v24 = vpop.permute.xlu1 %937  ;;  %v985_v26 = vmul.f32 0.8543878, %v963_v23 }
 0x6c7   :  { %v949_v27 = vsel %vm2554_vm4, %v936_v17, %v938_v24  ;;  %vm2558_vm4 = vmmov %vm2556_vm0 }
 0x6c8   :  { %v961_v28 = vadd.f32 %v949_v27, %v897_v46  ;;  %1007 = vrot.lane.b32.xlu1 %v985_v26, %s1880_s29 }
 0x6ca   :  { %v982_v29 = vmul.f32 0.8543878, %v961_v28 }
 0x6cc   :  { %1001 = vrot.lane.b32.xlu2 %v982_v29, %s1880_s29 }
 0x6ce   :  { %v946_v30 = vpop.permute.xlu1 %945 }
 0x6cf   :  { %v952_v32 = vsel %vm2555_vm6, %v944_v21, %v946_v30  ;;  %vm2559_vm6 = vmmov %vm2556_vm0 }
 0x6d0   :  { %v964_v35 = vadd.f32 %v952_v32, %v900_v54 }
 0x6d2   :  { %v986_v36 = vmul.f32 0.8543878, %v964_v35 }
 0x6d4   :  { %1009 = vrot.lane.b32.xlu2 %v986_v36, %s1880_s29 }
 0x707   :  { %v998_v37 = vpop.permute.xlu0 %997 }
 0x708   :  { %v1011_v38 = vsel %vm2556_vm0, %v1729_v16, %v998_v37 }
 0x709   :  { %v1023_v41 = vadd.f32 %v1011_v38, %v959_v5 }
 0x70b   :  { %v1044_v43 = vmul.f32 0.72997856, %v1023_v41 }
 0x70d   :  { %1061 = vrot.lane.b32.xlu1 %v1044_v43, %s1873_s28 }
 0x722   :  { %v1006_v31 = vpop.permute.xlu0 %1005 }
 0x723   :  { %v1014_v44 = vsel %vm2557_vm9, %v1730_v2, %v1006_v31  ;;  %vm2560_vm9 = vmmov %vm2556_vm0 }
 0x724   :  { %v1026_v22 = vadd.f32 %v1014_v44, %v962_v15 }
 0x726   :  { %v1002_v45 = vpop.permute.xlu2 %1001  ;;  %v1048_v46 = vmul.f32 0.72997856, %v1026_v22 }
 0x727   :  { %v1000_v47 = vpop.permute.xlu1 %999 }
 0x728   :  { %v1012_v52 = vsel %vm2558_vm4, %v998_v37, %v1000_v47  ;;  %v1013_v53 = vsel %vm2559_vm6, %v1000_v47, %v1002_v45  ;;  %1069 = vrot.lane.b32.xlu1 %v1048_v46, %s1873_s28  ;;  %vm2561_vm4 = vcmask 64512  }
 0x729   :  { %v1024_v54 = vadd.f32 %v1012_v52, %v960_v19  ;;  %v1025_v40 = vadd.f32 %v1013_v53, %v961_v28  ;;  %vm2562_vm6 = vmmov %vm2561_vm4 }
 0x72a   :  { %v1733_v10 = vpop.permute.xlu0 %1732 }
 0x72b   :  { %v1046_v55 = vmul.f32 0.72997856, %v1025_v40  ;;  %v1045_v58 = vmul.f32 0.72997856, %v1024_v54  ;;  %v1734_v17 = vunpack.i.l.bf16 %v1733_v10  ;;  %v1735_v27 = vunpack.i.h.bf16 %v1733_v10 }
 0x72d   :  { %1065 = vrot.lane.b32.xlu0 %v1046_v55, %s1873_s28  ;;  %1063 = vrot.lane.b32.xlu2 %v1045_v58, %s1873_s28 }
 0x72e   :  { %v1010_v3 = vpop.permute.xlu2 %1009 }
 0x730   :  { %1737 = vrot.lane.b32.xlu1 %v1874_v0, %s1883_s30 }
 0x73a   :  { %v1008_v63 = vpop.permute.xlu1 %1007 }
 0x73b   :  { %v1015_v5 = vsel %vm2556_vm0, %v1006_v31, %v1008_v63  ;;  %v1016_v6 = vsel %vm2560_vm9, %v1008_v63, %v1010_v3  ;;  %vm2563_vm0 = vmmov %vm2561_vm4 }
 0x73c   :  { %v1027_v9 = vadd.f32 %v1015_v5, %v963_v23  ;;  %v1028_v12 = vadd.f32 %v1016_v6, %v964_v35  ;;  %vm2564_vm9 = vmmov %vm2563_vm0 }
 0x73e   :  { %v1050_v13 = vmul.f32 0.72997856, %v1028_v12  ;;  %v1049_v15 = vmul.f32 0.72997856, %v1027_v9 }
 0x740   :  { %1073 = vrot.lane.b32.xlu0 %v1050_v13, %s1873_s28  ;;  %1071 = vrot.lane.b32.xlu2 %v1049_v15, %s1873_s28 }
 0x77f   :  { %v1062_v18 = vpop.permute.xlu1 %1061 }
 0x780   :  { %v1075_v19 = vsel %vm2561_vm4, %v1734_v17, %v1062_v18  ;;  %vm2565_vm4 = vmmov %vm2563_vm0 }
 0x781   :  { %v1087_v20 = vadd.f32 %v1075_v19, %v1023_v41 }
 0x783   :  { %v1108_v21 = vmul.f32 0.5328687, %v1087_v20 }
 0x785   :  { %1125 = vrot.lane.b32.xlu2 %v1108_v21, %s1883_s30 }
 0x787   :  { %v1064_v11 = vpop.permute.xlu2 %1063 }
 0x788   :  { %v1076_v24 = vsel %vm2562_vm6, %v1062_v18, %v1064_v11  ;;  %vm2566_vm6 = vmmov %vm2563_vm0 }
 0x789   :  { %v1088_v23 = vadd.f32 %v1076_v24, %v1024_v54 }
 0x78b   :  { %v1109_v26 = vmul.f32 0.5328687, %v1088_v23 }
 0x78d   :  { %1127 = vrot.lane.b32.xlu0 %v1109_v26, %s1883_s30 }
 0x79a   :  { %v1072_v28 = vpop.permute.xlu2 %1071  ;;  %v1070_v29 = vpop.permute.xlu1 %1069 }
 0x79b   :  { %v1078_v30 = vsel %vm2563_vm0, %v1735_v27, %v1070_v29  ;;  %v1079_v32 = vsel %vm2564_vm9, %v1070_v29, %v1072_v28  ;;  %vm2567_vm0 = vcmask 130048  }
 0x79c   :  { %v1090_v35 = vadd.f32 %v1078_v30, %v1026_v22  ;;  %v1091_v36 = vadd.f32 %v1079_v32, %v1027_v9  ;;  %vm2568_vm9 = vmmov %vm2567_vm0 }
 0x79e   :  { %v1113_v4 = vmul.f32 0.5328687, %v1091_v36  ;;  %v1112_v16 = vmul.f32 0.5328687, %v1090_v35 }
 0x79f   :  { %v1066_v37 = vpop.permute.xlu0 %1065 }
 0x7a0   :  { %v1077_v38 = vsel %vm2565_vm4, %v1064_v11, %v1066_v37  ;;  %1135 = vrot.lane.b32.xlu0 %v1113_v4, %s1883_s30  ;;  %1133 = vrot.lane.b32.xlu2 %v1112_v16, %s1883_s30  ;;  %vm2569_vm4 = vmmov %vm2567_vm0 }
 0x7a1   :  { %v1089_v41 = vadd.f32 %v1077_v38, %v1025_v40 }
 0x7a2   :  { %v1738_v45 = vpop.permute.xlu1 %1737 }
 0x7a3   :  { %v1110_v43 = vmul.f32 0.5328687, %v1089_v41  ;;  %v1739_v46 = vunpack.i.l.bf16 %v1738_v45  ;;  %v1740_v40 = vunpack.i.h.bf16 %v1738_v45 }
 0x7a5   :  { %1129 = vrot.lane.b32.xlu1 %v1110_v43, %s1883_s30 }
 0x7a8   :  { %1742 = vrot.lane.b32.xlu2 %v1874_v0, %s1885_s4 }
 0x7b2   :  { %v1074_v2 = vpop.permute.xlu0 %1073 }
 0x7b3   :  { %v1080_v31 = vsel %vm2566_vm6, %v1072_v28, %v1074_v2  ;;  %vm2570_vm6 = vmmov %vm2567_vm0 }
 0x7b4   :  { %v1092_v44 = vadd.f32 %v1080_v31, %v1028_v12 }
 0x7b6   :  { %v1114_v22 = vmul.f32 0.5328687, %v1092_v44 }
 0x7b8   :  { %1137 = vrot.lane.b32.xlu1 %v1114_v22, %s1883_s30 }
 0x7df   :  { %v1126_v47 = vpop.permute.xlu2 %1125 }
 0x7e0   :  { %v1139_v52 = vsel %vm2567_vm0, %v1739_v46, %v1126_v47 }
 0x7e1   :  { %v1151_v53 = vadd.f32 %v1139_v52, %v1087_v20 }
 0x7e3   :  { %v1172_v54 = vmul.f32 0.28394902, %v1151_v53 }
 0x7e5   :  { %1189 = vrot.lane.b32.xlu0 %v1172_v54, %s1885_s4 }
 0x7fa   :  { %v1134_v55 = vpop.permute.xlu2 %1133 }
 0x7fb   :  { %v1142_v58 = vsel %vm2568_vm9, %v1740_v40, %v1134_v55  ;;  %vm2571_vm9 = vmmov %vm2567_vm0 }
 0x7fc   :  { %v1154_v3 = vadd.f32 %v1142_v58, %v1090_v35 }
 0x7fe   :  { %v1176_v63 = vmul.f32 0.28394902, %v1154_v3 }
 0x7ff   :  { %v1128_v5 = vpop.permute.xlu0 %1127 }
 0x800   :  { %v1140_v6 = vsel %vm2569_vm4, %v1126_v47, %v1128_v5  ;;  %1197 = vrot.lane.b32.xlu0 %v1176_v63, %s1885_s4  ;;  %vm2572_vm4 = vcmask 261120  }
 0x801   :  { %v1152_v9 = vadd.f32 %v1140_v6, %v1088_v23 }
 0x802   :  { %v1743_v27 = vpop.permute.xlu2 %1742 }
 0x803   :  { %v1173_v12 = vmul.f32 0.28394902, %v1152_v9  ;;  %v1744_v28 = vunpack.i.l.bf16 %v1743_v27  ;;  %v1745_v16 = vunpack.i.h.bf16 %v1743_v27 }
 0x805   :  { %1191 = vrot.lane.b32.xlu1 %v1173_v12, %s1885_s4 }
 0x812   :  { %v1136_v13 = vpop.permute.xlu0 %1135 }
 0x813   :  { %v1143_v15 = vsel %vm2570_vm6, %v1134_v55, %v1136_v13  ;;  %vm2573_vm6 = vmmov %vm2572_vm4 }
 0x814   :  { %v1155_v10 = vadd.f32 %v1143_v15, %v1091_v36 }
 0x816   :  { %v1177_v17 = vmul.f32 0.28394902, %v1155_v10 }
 0x817   :  { %v1130_v18 = vpop.permute.xlu1 %1129 }
 0x818   :  { %v1141_v19 = vsel %vm2567_vm0, %v1128_v5, %v1130_v18  ;;  %1199 = vrot.lane.b32.xlu1 %v1177_v17, %s1885_s4  ;;  %vm2574_vm0 = vmmov %vm2572_vm4 }
 0x819   :  { %v1153_v20 = vadd.f32 %v1141_v19, %v1089_v41 }
 0x81b   :  { %v1174_v21 = vmul.f32 0.28394902, %v1153_v20 }
 0x81d   :  { %1193 = vrot.lane.b32.xlu2 %v1174_v21, %s1885_s4 }
 0x82a   :  { %v1138_v11 = vpop.permute.xlu1 %1137 }
 0x82b   :  { %v1144_v24 = vsel %vm2571_vm9, %v1136_v13, %v1138_v11  ;;  %vm2575_vm9 = vmmov %vm2574_vm0 }
 0x82c   :  { %v1156_v23 = vadd.f32 %v1144_v24, %v1092_v44 }
 0x82e   :  { %v1178_v26 = vmul.f32 0.28394902, %v1156_v23 }
 0x830   :  { %1201 = vrot.lane.b32.xlu2 %v1178_v26, %s1885_s4 }
 0x838   :  { %1747 = vrot.lane.b32.xlu2 %v1874_v0, %s1889_s5 }
 0x857   :  { %v1190_v29 = vpop.permute.xlu0 %1189 }
 0x858   :  { %v1203_v30 = vsel %vm2572_vm4, %v1744_v28, %v1190_v29  ;;  %vm2576_vm4 = vmmov %vm2574_vm0 }
 0x859   :  { %v1215_v32 = vadd.f32 %v1203_v30, %v1151_v53 }
 0x85b   :  { %v1236_v35 = vmul.f32 0.08062705, %v1215_v32 }
 0x85d   :  { %1253 = vrot.lane.b32.xlu0 %v1236_v35, %s1889_s5 }
 0x872   :  { %v1198_v41 = vpop.permute.xlu0 %1197 }
 0x873   :  { %v1206_v44 = vsel %vm2575_vm9, %v1745_v16, %v1198_v41 }
 0x874   :  { %v1218_v22 = vadd.f32 %v1206_v44, %v1154_v3 }
 0x876   :  { %v1240_v45 = vmul.f32 0.08062705, %v1218_v22 }
 0x877   :  { %v1192_v36 = vpop.permute.xlu1 %1191  ;;  %v1194_v4 = vpop.permute.xlu2 %1193 }
 0x878   :  { %v1204_v37 = vsel %vm2573_vm6, %v1190_v29, %v1192_v36  ;;  %v1205_v38 = vsel %vm2574_vm0, %v1192_v36, %v1194_v4  ;;  %vm2577_vm6 = vmmov %vm2574_vm0  ;;  %vm2578_vm0 = vcmask 523264  }
 0x879   :  { %v1216_v43 = vadd.f32 %v1204_v37, %v1152_v9  ;;  %v1217_v2 = vadd.f32 %v1205_v38, %v1153_v20  ;;  %vm2579_vm9 = vmmov %vm2578_vm0 }
 0x87b   :  { %v1237_v0 = vmul.f32 0.08062705, %v1216_v43  ;;  %v1238_v31 = vmul.f32 0.08062705, %v1217_v2 }
 0x87d   :  { %1255 = vrot.lane.b32.xlu1 %v1237_v0, %s1889_s5  ;;  %1257 = vrot.lane.b32.xlu0 %v1238_v31, %s1889_s5 }
 0x885   :  { %1261 = vrot.lane.b32.xlu1 %v1240_v45, %s1889_s5 }
 0x88a   :  { %v1200_v46 = vpop.permute.xlu1 %1199  ;;  %v1202_v47 = vpop.permute.xlu2 %1201 }
 0x88b   :  { %v1207_v52 = vsel %vm2576_vm4, %v1198_v41, %v1200_v46  ;;  %v1208_v53 = vsel %vm2577_vm6, %v1200_v46, %v1202_v47  ;;  %vm2580_vm4 = vmmov %vm2578_vm0 }
 0x88c   :  { %v1219_v54 = vadd.f32 %v1207_v52, %v1155_v10  ;;  %v1220_v40 = vadd.f32 %v1208_v53, %v1156_v23  ;;  %vm2581_vm6 = vmmov %vm2578_vm0 }
 0x88e   :  { %v1241_v55 = vmul.f32 0.08062705, %v1219_v54  ;;  %v1242_v58 = vmul.f32 0.08062705, %v1220_v40 }
 0x890   :  { %1263 = vrot.lane.b32.xlu2 %v1241_v55, %s1889_s5  ;;  %1265 = vrot.lane.b32.xlu0 %v1242_v58, %s1889_s5 }
 0x892   :  { %v1748_v63 = vpop.permute.xlu2 %1747 }
 0x893   :  { %v1749_v5 = vunpack.i.l.bf16 %v1748_v63  ;;  %v1750_v27 = vunpack.i.h.bf16 %v1748_v63 }
 0x8cf   :  { %v1254_v3 = vpop.permute.xlu0 %1253 }
 0x8d0   :  { %v1267_v6 = vsel %vm2578_vm0, %v1749_v5, %v1254_v3 }
 0x8d1   :  { %v2361_v9 = vadd.f32 %v1267_v6, %v1215_v32 }
 0x8d3   :  { %v1357_v12 = vmul.f32 0.75927013, %v2361_v9  ;;  %v1304_v19 = vmul.f32 0.0065007205, %v2361_v9  ;;  %v1335_v26 = vmul.f32 4.225937e-05, %v2361_v9 }
 0x8d5   :  { %1369 = vrot.lane.b32.xlu1 %v1357_v12, %s1903_s7 }
 0x8ea   :  { %v1264_v28 = vpop.permute.xlu2 %1263 }
 0x8ef   :  { %v1256_v13 = vpop.permute.xlu1 %1255  ;;  %v1258_v15 = vpop.permute.xlu0 %1257 }
 0x8f0   :  { %v1268_v10 = vsel %vm2579_vm9, %v1254_v3, %v1256_v13  ;;  %v1269_v17 = vsel %vm2580_vm4, %v1256_v13, %v1258_v15  ;;  %vm2582_vm9 = vmmov %vm2578_vm0  ;;  %vm1381_vm4 = vcmask 56320  }
 0x8f1   :  { %v1280_v18 = vadd.f32 %v1268_v10, %v1216_v43  ;;  %v1281_v11 = vadd.f32 %v1269_v17, %v1217_v2  ;;  %v1766_v2 = vld [vmem:[#allocation9] sm:$0xff] }
 0x8f2   :  { %v1398_v0 = vmul.f32 0.01, %v1766_v2 }
 0x8f3   :  { %v1305_v20 = vmul.f32 0.0065007205, %v1280_v18  ;;  %v1310_v21 = vadd.f32 %v1304_v19, %v1280_v18 }
 0x8f5   :  { %v1311_v24 = vadd.f32 %v1305_v20, %v1281_v11  ;;  %v1358_v23 = vmul.f32 0.75927013, %v1310_v21 }
 0x8f7   :  { %v1262_v29 = vpop.permute.xlu1 %1261  ;;  %1371 = vrot.lane.b32.xlu2 %v1358_v23, %s1903_s7  ;;  %v1341_v30 = vadd.f32 %v1335_v26, %v1311_v24 }
 0x8f8   :  { %v1270_v32 = vsel %vm2581_vm6, %v1750_v27, %v1262_v29  ;;  %v1271_v35 = vsel %vm2578_vm0, %v1262_v29, %v1264_v28 }
 0x8f9   :  { %v1282_v36 = vadd.f32 %v1270_v32, %v1218_v22  ;;  %v1359_v4 = vmul.f32 0.75927013, %v1341_v30  ;;  %v1283_v16 = vadd.f32 %v1271_v35, %v1219_v54  ;;  %v1399_v22 = vmul.f32 0.01, %v2069_v33 }
 0x8fa   :  { %v1422_v33 = vlaneseq }
 0x8fb   :  { %v1307_v37 = vmul.f32 0.0065007205, %v1282_v36  ;;  %1373 = vrot.lane.b32.xlu0 %v1359_v4, %s1903_s7  ;;  %v1360_v38 = vmul.f32 0.75927013, %v1282_v36  ;;  %v1308_v45 = vmul.f32 0.0065007205, %v1283_v16 }
 0x8fc   :  { %v1338_v52 = vmul.f32 4.225937e-05, %v1282_v36  ;;  %v1423_v11 = vshrl.u32 %v1422_v33, 7 }
 0x8fd   :  { %v1313_v41 = vadd.f32 %v1307_v37, %v1283_v16  ;;  %1375 = vrot.lane.b32.xlu1 %v1360_v38, %s1903_s7 }
 0x8fe   :  { %vm1424_vm6 = vcmp.eq.s32.totalorder %v1423_v11, 0  ;;  %vm1433_vm0 = vcmp.eq.s32.totalorder %v1423_v11, 1  ;;  %vm1451_vm11 = vcmp.eq.s32.totalorder %v1423_v11, 3 }
 0x8ff   :  { %v1361_v43 = vmul.f32 0.75927013, %v1313_v41 }
 0x901   :  { %1377 = vrot.lane.b32.xlu2 %v1361_v43, %s1903_s7 }
 0x902   :  { %v1266_v31 = vpop.permute.xlu0 %1265 }
 0x903   :  { %v1272_v44 = vsel %vm2582_vm9, %v1264_v28, %v1266_v31  ;;  %vm1442_vm9 = vcmp.eq.s32.totalorder %v1423_v11, 2 }
 0x904   :  { %v1284_v46 = vadd.f32 %v1272_v44, %v1220_v40 }
 0x905   :  { %1408 = vperm.xlu1 %1751, %v1398_v0  }
 0x906   :  { %v1314_v47 = vadd.f32 %v1308_v45, %v1284_v46 }
 0x908   :  { %v1344_v53 = vadd.f32 %v1338_v52, %v1314_v47 }
 0x909   :  { %1413 = vperm.xlu2 %1752, %v1399_v22  }
 0x90a   :  { %v1362_v54 = vmul.f32 0.75927013, %v1344_v53 }
 0x90c   :  { %1379 = vrot.lane.b32.xlu0 %v1362_v54, %s1903_s7 }
 0x947   :  { %v1370_v58 = vpop.permute.xlu1 %1369 }
 0x948   :  { %v1392_v15 = vsub.f32 %v2361_v9, %v1370_v58 }
 0x94a   :  { %v1400_v24 = vmul.f32 0.10941424, %v1392_v15 }
 0x951   :  { %v1372_v55 = vpop.permute.xlu2 %1371 }
 0x952   :  { %v1382_v5 = vsel %vm1381_vm4, %v1370_v58, %v1372_v55 }
 0x953   :  { %v1393_v10 = vsub.f32 %v1310_v21, %v1382_v5 }
 0x955   :  { %v1401_v23 = vmul.f32 0.10941424, %v1393_v10 }
 0x95b   :  { %v1378_v63 = vpop.permute.xlu2 %1377 }
 0x963   :  { %v1414_v20 = vpop.permute.xlu2 %1413 }
 0x96d   :  { %v1374_v6 = vpop.permute.xlu0 %1373 }
 0x96e   :  { %v1383_v17 = vsel %vm1381_vm4, %v1372_v55, %v1374_v6 }
 0x96f   :  { %v1376_v3 = vpop.permute.xlu1 %1375  ;;  %v1394_v26 = vsub.f32 %v1341_v30, %v1383_v17 }
 0x970   :  { %v1384_v40 = vsel %vm1381_vm4, %v1376_v3, %v1378_v63  ;;  %v1395_v12 = vsub.f32 %v1282_v36, %v1376_v3 }
 0x971   :  { %v1396_v13 = vsub.f32 %v1313_v41, %v1384_v40  ;;  %v1402_v9 = vmul.f32 0.10941424, %v1394_v26 }
 0x972   :  { %v1403_v18 = vmul.f32 0.10941424, %v1395_v12 }
 0x973   :  { %v1404_v19 = vmul.f32 0.10941424, %v1396_v13 }
 0x974   :  { %v2382_v27 = vadd.f32 %v1414_v20, %v1403_v18 }
 0x975   :  { %v2384_v29 = vadd.f32 %v1414_v20, %v1404_v19 }
 0x976   :  { %v1445_v30 = vperm.slane %v2382_v27, 2  ;;  %v1454_v2 = vperm.slane %v2382_v27, 7 }
 0x977   :  { %v1409_v28 = vpop.permute.xlu1 %1408  ;;  %v1446_v37 = vperm.slane %v2384_v29, 2  ;;  %v1455_v0 = vperm.slane %v2384_v29, 7 }
 0x978   :  { %v2386_v32 = vadd.f32 %v1409_v28, %v1400_v24  ;;  %v2388_v35 = vadd.f32 %v1409_v28, %v1401_v23  ;;  %v2396_v38 = vadd.f32 %v1409_v28, %v1402_v9 }
 0x97a   :  { %v1427_v21 = vperm.slane %v2386_v32, 0  ;;  %v1428_v36 = vperm.slane %v2388_v35, 0  ;;  %v1436_v4 = vperm.slane %v2386_v32, 5  ;;  %v1437_v16 = vperm.slane %v2388_v35, 5 }
 0x97b   :  { %v1429_v55 = vperm.slane %v2396_v38, 0  ;;  %v1438_v40 = vperm.slane %v2396_v38, 5 }
 0x97c   :  { %v1430_v41 = vsel %vm1424_vm6, %v1427_v21, 0.0  ;;  %v1431_v43 = vsel %vm1424_vm6, %v1428_v36, 0.0 }
 0x97d   :  { %v1439_v31 = vsel %vm1433_vm0, %v1436_v4, %v1430_v41  ;;  %v1440_v44 = vsel %vm1433_vm0, %v1437_v16, %v1431_v43  ;;  %v1432_v12 = vsel %vm1424_vm6, %v1429_v55, 0.0 }
 0x97e   :  { %v1380_v45 = vpop.permute.xlu0 %1379  ;;  %v1449_v46 = vsel %vm1442_vm9, %v1446_v37, %v1440_v44  ;;  %v1448_v22 = vsel %vm1442_vm9, %v1445_v30, %v1439_v31  ;;  %v1441_v15 = vsel %vm1433_vm0, %v1438_v40, %v1432_v12 }
 0x97f   :  { %v1385_v47 = vsel %vm1381_vm4, %v1378_v63, %v1380_v45  ;;  %v1458_v52 = vsel %vm1451_vm11, %v1455_v0, %v1449_v46  ;;  %v1457_v54 = vsel %vm1451_vm11, %v1454_v2, %v1448_v22 }
 0x980   :  { %v1397_v58 = vsub.f32 %v1344_v53, %v1385_v47  ;;  %v1461_v5 = vmax.f32 %v1458_v52, 1e-30  ;;  %v1460_v3 = vmax.f32 %v1457_v54, 1e-30 }
 0x982   :  { %v1405_v6 = vmul.f32 0.10941424, %v1397_v58  ;;  %1760 = vrsqrt.f32 %v1461_v5  ;;  %vm1479_vm0 = vweird.f32 %v1461_v5 }
 0x983   :  { %1762 = vrsqrt.f32 %v1460_v3 }
 0x984   :  { %v2412_v13 = vadd.f32 %v1414_v20, %v1405_v6 }
 0x986   :  { %v1447_v63 = vperm.slane %v2412_v13, 2  ;;  %v1456_v33 = vperm.slane %v2412_v13, 7 }
 0x988   :  { %v1761_v10 = vpop.eup %1760  ;;  %v1450_v53 = vsel %vm1442_vm9, %v1447_v63, %v1441_v15  ;;  %vm1469_vm9 = vweird.f32 %v1460_v3 }
 0x989   :  { %v1763_v17 = vpop.eup %1762  ;;  %v1474_v18 = vmul.f32 %v1761_v10, %v1461_v5  ;;  %v1459_v19 = vsel %vm1451_vm11, %v1456_v33, %v1450_v53  ;;  %vm1480_vm4 = vweird.f32 %v1761_v10 }
 0x98a   :  { %v1464_v24 = vmul.f32 %v1763_v17, %v1460_v3  ;;  %v1462_v23 = vmax.f32 %v1459_v19, 1e-30  ;;  %vm1470_vm6 = vweird.f32 %v1763_v17  ;;  %vm1481_vm7 = vmor %vm1479_vm0, %vm1480_vm4  ;;  %vm2587_vm4 = vcmp.eq.s32.totalorder %v2142_v25, 1 }
 0x98b   :  { %v1475_v26 = vmul.f32 %v1761_v10, %v1474_v18  ;;  %vm1471_vm13 = vmor %vm1469_vm9, %vm1470_vm6  ;;  %vm2588_vm6 = vcmp.eq.s32.totalorder %v2182_v7, 1  ;;  %vm2592_vm0 = vcmp.eq.s32.totalorder %v2098_v59, 1  ;;  %vm2597_vm9 = vcmp.eq.s32.totalorder %v2162_v42, 1 }
 0x98c   :  { %v1465_v28 = vmul.f32 %v1763_v17, %v1464_v24  ;;  %1764 = vrsqrt.f32 %v1462_v23  ;;  %vm1489_vm10 = vweird.f32 %v1462_v23 }
 0x98d   :  { %v1476_v20 = vmul.f32 0.5, %v1475_v26 }
 0x98e   :  { %v1466_v9 = vmul.f32 0.5, %v1465_v28 }
 0x98f   :  { %v1477_v21 = vsub.f32 1.5, %v1476_v20 }
 0x990   :  { %v1467_v36 = vsub.f32 1.5, %v1466_v9 }
 0x991   :  { %v1478_v4 = vmul.f32 %v1761_v10, %v1477_v21 }
 0x992   :  { %v1765_v30 = vpop.eup %1764  ;;  %v1468_v16 = vmul.f32 %v1763_v17, %v1467_v36 }
 0x993   :  { %v1482_v37 = vsel %vm1481_vm7, %v1761_v10, %v1478_v4  ;;  %v1484_v11 = vmul.f32 %v1765_v30, %v1462_v23  ;;  %vm1490_vm11 = vweird.f32 %v1765_v30  ;;  %vm2583_vm7 = vcmask 7168  }
 0x994   :  { %1498 = vrot.lane.b32.xlu1 %v1482_v37, %s1876_s0  ;;  %v1472_v41 = vsel %vm1471_vm13, %v1763_v17, %v1468_v16  ;;  %vm1491_vm5 = vmor %vm1489_vm10, %vm1490_vm11  ;;  %vm2585_vm10 = vcmp.eq.s32.totalorder %v2160_v39, 1 }
 0x995   :  { %1496 = vrot.lane.b32.xlu0 %v1472_v41, %s1876_s0  ;;  %v1485_v43 = vmul.f32 %v1765_v30, %v1484_v11  ;;  %vm2584_vm13 = vmmov %vm2583_vm7 }
 0x996   :  { %vm2598_vm11 = vmmov %vm2597_vm9 }
 0x997   :  { %v1486_v2 = vmul.f32 0.5, %v1485_v43 }
 0x999   :  { %v1487_v0 = vsub.f32 1.5, %v1486_v2 }
 0x99b   :  { %v1488_v31 = vmul.f32 %v1765_v30, %v1487_v0 }
 0x99d   :  { %v1492_v44 = vsel %vm1491_vm5, %v1765_v30, %v1488_v31  ;;  %vm2586_vm5 = vcmp.eq.s32.totalorder %v2100_v61, 1 }
 0x99e   :  { %1500 = vrot.lane.b32.xlu2 %v1492_v44, %s1876_s0 }
 0x9f8   :  { %v1501_v45 = vpop.permute.xlu2 %1500 }
 0xa06   :  { %v1499_v46 = vpop.permute.xlu1 %1498 }
 0xa07   :  { %v1503_v22 = vsel %vm2583_vm7, %v1499_v46, %v1501_v45  ;;  %v1497_v47 = vpop.permute.xlu0 %1496  ;;  %vm2599_vm7 = vcmp.eq.s32.totalorder %v2166_v56, 1 }
 0xa08   :  { %v1507_v52 = vmul.f32 %v1503_v22, %v2176_v62  ;;  %v1502_v54 = vsel %vm2584_vm13, %v1497_v47, %v1499_v46  ;;  %vm2600_vm13 = vmmov %vm2599_vm7 }
 0xa09   :  { %v1506_v55 = vmul.f32 %v1502_v54, %v2168_v57 }
 0xa0a   :  { %v1509_v58 = vperm.slane %v1507_v52, 0  ;;  %v1519_v6 = vperm.slane %v1507_v52, 1  ;;  %v1529_v9 = vperm.slane %v1507_v52, 2  ;;  %v1539_v4 = vperm.slane %v1507_v52, 3 }
 0xa0b   :  { %v1508_v5 = vperm.slane %v1506_v55, 0  ;;  %v1518_v3 = vperm.slane %v1506_v55, 1  ;;  %v1528_v40 = vperm.slane %v1506_v55, 2  ;;  %v1538_v63 = vperm.slane %v1506_v55, 3 }
 0xa0c   :  { %v1511_v53 = vsel %vm709_vm15, %v1509_v58, 0.0  ;;  %v1515_v24 = vsel %vm726_vm14, %v1509_v58, 0.0  ;;  %v1513_v28 = vsel %vm710_vm3, %v1509_v58, 0.0  ;;  %v1517_v51 = vsel %vm2592_vm0, %v1509_v58, 0.0 }
 0xa0d   :  { %v1514_v12 = vsel %vm726_vm14, %v1508_v5, 0.0  ;;  %v1512_v33 = vsel %vm710_vm3, %v1508_v5, 0.0  ;;  %v1510_v15 = vsel %vm709_vm15, %v1508_v5, 0.0  ;;  %vm2589_vm15 = vcmp.eq.s32.totalorder %v2119_v14, 1  ;;  %vm2590_vm14 = vmmov %vm2586_vm5 }
 0xa0e   :  { %v1524_v62 = vsel %vm757_vm8, %v1518_v3, %v1514_v12  ;;  %v1522_v57 = vsel %vm741_vm2, %v1518_v3, %v1512_v33  ;;  %v1520_v10 = vsel %vm740_vm1, %v1518_v3, %v1510_v15  ;;  %v1521_v48 = vsel %vm740_vm1, %v1519_v6, %v1511_v53  ;;  %vm2591_vm3 = vmmov %vm2585_vm10 }
 0xa0f   :  { %v1534_v17 = vsel %vm788_vm12, %v1528_v40, %v1524_v62  ;;  %v1532_v18 = vsel %vm2585_vm10, %v1528_v40, %v1522_v57  ;;  %v1530_v19 = vsel %vm2586_vm5, %v1528_v40, %v1520_v10  ;;  %v1525_v20 = vsel %vm757_vm8, %v1519_v6, %v1515_v24  ;;  %vm2593_vm1 = vmmov %vm2589_vm15 }
 0xa10   :  { %v1544_v23 = vsel %vm2587_vm4, %v1538_v63, %v1534_v17  ;;  %v1542_v26 = vsel %vm2588_vm6, %v1538_v63, %v1532_v18  ;;  %v1540_v49 = vsel %vm2589_vm15, %v1538_v63, %v1530_v19  ;;  %v1523_v21 = vsel %vm741_vm2, %v1519_v6, %v1513_v28  ;;  %vm2594_vm8 = vmmov %vm2587_vm4 }
 0xa11   :  { %1578 = vrot.lane.b32.xlu1 %v1544_v23, %s1895_s6  ;;  %1556 = vrot.lane.b32.xlu2 %v1542_v26, %s1895_s6  ;;  %v1531_v34 = vsel %vm2590_vm14, %v1529_v9, %v1521_v48  ;;  %v1535_v36 = vsel %vm788_vm12, %v1529_v9, %v1525_v20  ;;  %v1533_v30 = vsel %vm2591_vm3, %v1529_v9, %v1523_v21  ;;  %vm2595_vm2 = vmmov %vm2592_vm0  ;;  %vm2601_vm10 = vcmp.eq.s32.totalorder %v2174_v60, 1 }
 0xa12   :  { %1552 = vrot.lane.b32.xlu0 %v1540_v49, %s1895_s6  ;;  %v1541_v50 = vsel %vm2593_vm1, %v1539_v4, %v1531_v34  ;;  %v1545_v8 = vsel %vm2594_vm8, %v1539_v4, %v1535_v36  ;;  %v1516_v61 = vsel %vm2595_vm2, %v1508_v5, 0.0  ;;  %vm2596_vm12 = vmmov %vm2588_vm6  ;;  %v1527_v39 = vsel %vm2597_vm9, %v1519_v6, %v1517_v51 }
 0xa13   :  { %v1543_v1 = vsel %vm2596_vm12, %v1539_v4, %v1533_v30  ;;  %v1526_v14 = vsel %vm2598_vm11, %v1518_v3, %v1516_v61  ;;  %v1537_v25 = vsel %vm2599_vm7, %v1529_v9, %v1527_v39  ;;  %vm2602_vm5 = vmmov %vm2601_vm10  ;;  %vm2603_vm4 = vcmask 1039360  }
 0xa14   :  { %v1536_v59 = vsel %vm2600_vm13, %v1528_v40, %v1526_v14  ;;  %v1547_v16 = vsel %vm2601_vm10, %v1539_v4, %v1537_v25  ;;  %vm2604_vm6 = vmmov %vm2603_vm4  ;;  %vm2607_vm3 = vcmask 7168  }
 0xa15   :  { %v1546_v7 = vsel %vm2602_vm5, %v1538_v63, %v1536_v59  ;;  %vm2605_vm15 = vmmov %vm2603_vm4 }
 0xa16   :  { %vm2606_vm14 = vmmov %vm2603_vm4 }
 0xa17   :  { %vm2608_vm0 = vmmov %vm2607_vm3 }
 0xa18   :  { %vm2609_vm1 = vmmov %vm2608_vm0 }
 0xa19   :  { %1554 = vrot.lane.b32.xlu1 %v1541_v50, %s1895_s6  ;;  %1580 = vrot.lane.b32.xlu2 %v1545_v8, %s1895_s6  ;;  %vm2610_vm8 = vmmov %vm2608_vm0 }
 0xa1a   :  { %1558 = vrot.lane.b32.xlu0 %v1543_v1, %s1895_s6 }
 0xa21   :  { %1584 = vrot.lane.b32.xlu1 %v1547_v16, %s1895_s6 }
 0xa22   :  { %1582 = vrot.lane.b32.xlu0 %v1546_v7, %s1895_s6 }
 0xa6b   :  { %v1557_v37 = vpop.permute.xlu2 %1556 }
 0xa6c   :  { %v1571_v47 = vmul.f32 %v1557_v37, %v2382_v27 }
 0xa73   :  { %v1581_v44 = vpop.permute.xlu2 %1580 }
 0xa83   :  { %v1579_v11 = vpop.permute.xlu1 %1578 }
 0xa84   :  { %v1553_v42 = vpop.permute.xlu0 %1552  ;;  %v1586_v45 = vsel %vm2604_vm6, %v1579_v11, %v1581_v44 }
 0xa85   :  { %v1568_v41 = vmul.f32 %v1553_v42, %v2386_v32 }
 0xa87   :  { %v1594_v43 = vmul.f32 %v1579_v11, %v1568_v41 }
 0xa89   :  { %1606 = vrot.lane.b32.xlu2 %v1594_v43, %s1876_s0 }
 0xa8b   :  { %v1555_v56 = vpop.permute.xlu1 %1554 }
 0xa8c   :  { %v1560_v2 = vsel %vm2603_vm4, %v1553_v42, %v1555_v56  ;;  %v1570_v0 = vmul.f32 %v1555_v56, %v2396_v38  ;;  %v1559_v31 = vpop.permute.xlu0 %1558 }
 0xa8d   :  { %v1569_v60 = vmul.f32 %v1560_v2, %v2388_v35  ;;  %v1561_v32 = vsel %vm2605_vm15, %v1557_v37, %v1559_v31  ;;  %v1573_v54 = vmul.f32 %v1559_v31, %v2412_v13 }
 0xa8e   :  { %v1596_v46 = vmul.f32 %v1581_v44, %v1570_v0  ;;  %v1572_v55 = vmul.f32 %v1561_v32, %v2384_v29 }
 0xa8f   :  { %v1595_v22 = vmul.f32 %v1586_v45, %v1569_v60 }
 0xa90   :  { %1610 = vrot.lane.b32.xlu1 %v1596_v46, %s1876_s0 }
 0xa91   :  { %1608 = vrot.lane.b32.xlu0 %v1595_v22, %s1876_s0 }
 0xa93   :  { %v1585_v52 = vpop.permute.xlu1 %1584 }
 0xa94   :  { %v1583_v38 = vpop.permute.xlu0 %1582  ;;  %v1599_v5 = vmul.f32 %v1585_v52, %v1573_v54 }
 0xa95   :  { %v1587_v35 = vsel %vm2606_vm14, %v1583_v38, %v1585_v52  ;;  %v1597_v58 = vmul.f32 %v1583_v38, %v1571_v47 }
 0xa96   :  { %v1598_v3 = vmul.f32 %v1587_v35, %v1572_v55 }
 0xa97   :  { %1612 = vrot.lane.b32.xlu2 %v1597_v58, %s1876_s0 }
 0xa98   :  { %1616 = vrot.lane.b32.xlu1 %v1599_v5, %s1876_s0 }
 0xa99   :  { %1614 = vrot.lane.b32.xlu0 %v1598_v3, %s1876_s0 }
 0xae3   :  { %v1607_v40 = vpop.permute.xlu2 %1606 }
 0xaf1   :  { %v1613_v63 = vpop.permute.xlu2 %1612 }
 0xb02   :  { %v1611_v6 = vpop.permute.xlu1 %1610 }
 0xb03   :  { %v1609_v27 = vpop.permute.xlu0 %1608 }
 0xb04   :  { %v1618_v12 = vsel %vm2607_vm3, %v1607_v40, %v1609_v27  ;;  %v1619_v13 = vsel %vm2608_vm0, %v1609_v27, %v1611_v6 }
 0xb05   :  { %1626 = vst [vmem:[#allocation10] sm:$0xff] %v1618_v12 }
 0xb06   :  { %1627 = vst [vmem:[#allocation10 + $0x8] sm:$0xff] %v1619_v13 }
 0xb0a   :  { %v1617_v29 = vpop.permute.xlu1 %1616 }
 0xb0b   :  { %v1615_v33 = vpop.permute.xlu0 %1614 }
 0xb0c   :  { %v1620_v15 = vsel %vm2609_vm1, %v1613_v63, %v1615_v33  ;;  %v1621_v62 = vsel %vm2610_vm8, %v1615_v33, %v1617_v29 }
 0xb0d   :  { %1628 = vst [vmem:[#allocation10 + $0x10] sm:$0xff] %v1620_v15 }
 0xb0e   :  { %1629 = vst [vmem:[#allocation10 + $0x18] sm:$0xff] %v1621_v62 }
 0xb0f   :  { %1642 = dma.vmem_to_hbm [thread:$0]  %s1635_s12, 512, %s1637_s10, [#allocation6], %s1905_s13, %s1905_s13, %s1883_s30  }
 0xb10   :  { %1867 = dma.done.wait [#allocation6], 512  }
 0xb11   :  { %1868 = vsyncadd [#allocation6], 4294966784 }
 0xb12   :  { %1647 = vsyncpa [#allocation5], 1 }
 0xb13   :  { %1648 = vsyncpa [#allocation8], 1 }
 0xb14   :  { %1649 = vsyncpa [#allocation6], 1 }

</bundles_post_ra>
